<compile_context>
chip_gen: v5e
topology: v5e:2x2
jax: 0.10.0
libtpu: 0.0.40
codegen_flags: <defaults>
</compile_context>

<pallas_src>
import math

import numpy as np
import jax
import jax.numpy as jnp
from jax.experimental import pallas as pl
from jax.experimental.pallas import tpu as pltpu

# ----------------------- synthetic BigGAN config (small) -----------------------
BATCH = 2
Z_DIM = 32            # hierarchical z: two chunks of 16
Z_CHUNK = 16          # chunk 0 -> initial linear, chunk 1 -> block conditioning
EMB_DIM = 16          # G.shared class-embedding dim
N_CLASSES = 1000
CH = 16               # feature channels
R4 = 4                # base spatial resolution (row coord)
S4 = 4                # base spatial resolution (lane-packed coord)
R = 8                 # final spatial resolution (row coord)  -> image width
S = 8                 # final spatial resolution (lane coord) -> image height
IMG_CH = 3
BN_EPS = 1e-5
K_IN = 64             # fused-matmul LHS width: [z0(16) | z1(16) | ey(16) | 1 | 0*15]
N_OUT = 640           # fused-matmul output columns: [4x4 map(256)|sc1(64)|sh1(64)|sc2(128)|sh2(128)]

_VMEM = pl.BlockSpec(memory_space=pltpu.MemorySpace.VMEM)

# TODO(synk): real BigGAN uses a pretrained G with self-attention and spectral
# norm; this synthetic 1-block generator keeps the architectural skeleton only.
# If real torch weights are ever loaded, their (Cout, Cin, kh, kw) conv tensors
# must be permuted into the banded (tap, s_in*C+cin, s_out*C+cout) layout built
# in init_params below, or results will be silently wrong.


# --------------------------- fused generator kernel ----------------------------
def make_kernel(B):
    C = CH
    NR = B * R                      # rows at full resolution (b-major, r-minor)

    def shifted_rows(v, dr):
        # v rows ordered (b, r); returns u with u[(b,r)] = v[(b, r+dr)] inside the
        # image and 0 outside (also zeroes the batch seam).  Only value ops:
        # one sublane slice, one non-minor concat, one iota mask.
        n, w = v.shape
        ridx = jax.lax.broadcasted_iota(jnp.int32, (n, w), 0) & (R - 1)
        zrow = jnp.zeros((1, w), jnp.float32)
        if dr == 1:
            u = jnp.concatenate([v[1:, :], zrow], axis=0)
            return jnp.where(ridx == R - 1, 0.0, u)
        else:  # dr == -1
            u = jnp.concatenate([zrow, v[:-1, :]], axis=0)
            return jnp.where(ridx == 0, 0.0, u)

    def conv_r(v, w_ref, idx0=0):
        # 3x3 conv: the s-direction taps (and, for conv1, the s-upsample and the
        # s zero padding) are folded into the banded weights; only the 3 row taps
        # remain, each a single well-shaped matmul.
        out = jnp.dot(v, w_ref[idx0 + 1], preferred_element_type=jnp.float32)          # dr = 0
        out += jnp.dot(shifted_rows(v, -1), w_ref[idx0 + 0], preferred_element_type=jnp.float32)
        out += jnp.dot(shifted_rows(v, +1), w_ref[idx0 + 2], preferred_element_type=jnp.float32)
        return out

    def kernel(zcat_ref, rhs_ref, wskip1_ref, wc2_ref, wrgb_ref, vec_ref, out_ref):
        f32 = jnp.float32

        # (1) ONE fused matmul: initial linear + all CCBN scales/shifts
        #     (BN running stats pre-folded into the RHS at init time).
        t = jnp.dot(zcat_ref[...], rhs_ref[...], preferred_element_type=f32)   # (B, 640)
        h0 = t[:, 0:256]          # 4x4xC map, columns ordered (r4, s4, c)
        sc1 = t[:, 256:320]       # CCBN1 scale, lanes (s4, c)
        sh1 = t[:, 320:384]       # CCBN1 shift
        sc2 = t[:, 384:512]       # CCBN2 scale, lanes (s, c)
        sh2 = t[:, 512:640]       # CCBN2 shift

        # (2) relayout 4x4 map -> rows=(b, r4), lanes=(s4, c):
        #     4 aligned lane slices + one non-minor concat (no scratch, no loop of stores)
        x4 = jnp.concatenate(
            [h0[:, r * (S4 * C):(r + 1) * (S4 * C)].reshape(B, 1, S4 * C) for r in range(R4)],
            axis=1).reshape(B * R4, S4 * C)                                    # (8, 64)

        # (3) nearest-2x upsample along r via broadcast (s-upsample folded into weights)
        x4u = jnp.broadcast_to(x4.reshape(B * R4, 1, S4 * C),
                               (B * R4, 2, S4 * C)).reshape(NR, S4 * C)        # (16, 64)

        # (4) CCBN1 + ReLU (pointwise -> commutes exactly with nearest upsampling)
        sc1r = jnp.broadcast_to(sc1.reshape(B, 1, S4 * C), (B, R, S4 * C)).reshape(NR, S4 * C)
        sh1r = jnp.broadcast_to(sh1.reshape(B, 1, S4 * C), (B, R, S4 * C)).reshape(NR, S4 * C)
        main = jnp.maximum(x4u * sc1r + sh1r, 0.0)                             # (16, 64)

        # (5) skip path: 1x1 conv with folded s-upsample (single matmul), reuses x4u
        h_skip = jnp.dot(x4u, wskip1_ref[0], preferred_element_type=f32) + vec_ref[4:5, :]

        # (6) conv1 (3x3, input still on the s4 grid: upsample folded into the weights)
        h = conv_r(main, wskip1_ref, idx0=1) + vec_ref[2:3, :]                 # (16, 128)

        # (7) CCBN2 + ReLU, conv2 (3x3), residual add
        sc2r = jnp.broadcast_to(sc2.reshape(B, 1, S * C), (B, R, S * C)).reshape(NR, S * C)
        sh2r = jnp.broadcast_to(sh2.reshape(B, 1, S * C), (B, R, S * C)).reshape(NR, S * C)
        h = jnp.maximum(h * sc2r + sh2r, 0.0)
        h = conv_r(h, wc2_ref) + vec_ref[3:4, :]
        h = h + h_skip

        # (8) output layer: folded BN -> ReLU -> 3x3 conv to RGB -> tanh
        h = jnp.maximum(h * vec_ref[0:1, :] + vec_ref[1:2, :], 0.0)
        rgb = jnp.tanh(conv_r(h, wrgb_ref) + vec_ref[5:6, 0:IMG_CH * S])       # (16, 24), lanes (c, s)

        # (9) WrapperBigGAN epilogue: global min-max normalisation (exactly the
        #     3*8*8*B real outputs -- no padded lanes) + NCHW-friendly layout.
        #     NOTE: division by zero if max == min, matching the PyTorch reference.
        lo = jnp.min(rgb)
        hi = jnp.max(rgb)
        img = (rgb - lo) / (hi - lo)
        out_ref[...] = jnp.transpose(img.reshape(B, R, IMG_CH * S), (0, 2, 1))  # (B, 24, 8)

    return kernel


# -------------------------------- parameters -----------------------------------
def init_params(key):
    C = CH
    ks = jax.random.split(key, 10)

    def nrm(k, shape, scale):
        return scale * jax.random.normal(k, shape, jnp.float32)

    cond_dim = EMB_DIM + Z_CHUNK

    # "conceptual" synthetic-BigGAN parameters
    shared = nrm(ks[0], (N_CLASSES, EMB_DIM), 0.2)                         # G.shared table
    w_lin = np.asarray(nrm(ks[1], (Z_CHUNK, R4 * S4 * C), 1.0 / math.sqrt(Z_CHUNK)))
    b_lin = np.zeros((R4 * S4 * C,), np.float32)

    ccbn1_g = np.asarray(nrm(ks[2], (cond_dim, C), 0.05))
    ccbn1_b = np.asarray(nrm(ks[3], (cond_dim, C), 0.05))
    ccbn2_g = np.asarray(nrm(ks[4], (cond_dim, C), 0.05))
    ccbn2_b = np.asarray(nrm(ks[5], (cond_dim, C), 0.05))

    conv1_w = np.asarray(nrm(ks[6], (3, 3, C, C), 1.0 / math.sqrt(9 * C)))   # (dr, ds, cin, cout)
    conv1_b = np.zeros((C,), np.float32)
    conv2_w = np.asarray(nrm(ks[7], (3, 3, C, C), 1.0 / math.sqrt(9 * C)))
    conv2_b = np.zeros((C,), np.float32)
    convsc_w = np.asarray(nrm(ks[8], (C, C), 1.0 / math.sqrt(C)))
    convsc_b = np.zeros((C,), np.float32)
    convrgb_w = np.asarray(nrm(ks[9], (3, 3, C, IMG_CH), 1.0 / math.sqrt(9 * C)))
    convrgb_b = np.zeros((IMG_CH,), np.float32)

    # eval-mode BN running stats + output-BN affine (folded below)
    bn1_rm = np.zeros((C,), np.float32); bn1_rv = np.ones((C,), np.float32)
    bn2_rm = np.zeros((C,), np.float32); bn2_rv = np.ones((C,), np.float32)
    bn3_rm = np.zeros((C,), np.float32); bn3_rv = np.ones((C,), np.float32)
    bn3_g = np.ones((C,), np.float32); bn3_b = np.zeros((C,), np.float32)

    inv1 = 1.0 / np.sqrt(bn1_rv + BN_EPS); a1 = bn1_rm * inv1
    inv2 = 1.0 / np.sqrt(bn2_rv + BN_EPS); a2 = bn2_rm * inv2
    inv3 = 1.0 / np.sqrt(bn3_rv + BN_EPS)

    # ---- fused RHS (64, 640): initial linear + CCBN affines w/ folded BN stats ----
    # LHS layout: [z0 (0:16) | z1 (16:32) | ey (32:48) | 1 (48) | zero pad (49:64)]
    rhs = np.zeros((K_IN, N_OUT), np.float32)
    rhs[0:Z_CHUNK, 0:256] = w_lin                 # image block, cols ordered (r4, s4, c)
    rhs[48, 0:256] = b_lin

    G1s = ccbn1_g * inv1[None, :]                 # scale1 = inv1 + cond @ G1s
    B1s = ccbn1_b - ccbn1_g * a1[None, :]         # shift1 = -a1  + cond @ B1s
    G2s = ccbn2_g * inv2[None, :]
    B2s = ccbn2_b - ccbn2_g * a2[None, :]

    def put_cond(col0, reps, W, const):
        # cond = [ey | z1]; ey lives at LHS rows 32:48, z1 at rows 16:32
        rhs[32:48, col0:col0 + C * reps] = np.tile(W[0:EMB_DIM], (1, reps))
        rhs[16:32, col0:col0 + C * reps] = np.tile(W[EMB_DIM:], (1, reps))
        rhs[48, col0:col0 + C * reps] = np.tile(const, reps)

    put_cond(256, S4, G1s, inv1)                  # CCBN1 scale, lanes (s4, c)
    put_cond(320, S4, B1s, -a1)                   # CCBN1 shift
    put_cond(384, S, G2s, inv2)                   # CCBN2 scale, lanes (s, c)
    put_cond(512, S, B2s, -a2)                    # CCBN2 shift

    # ---- slab B (4, 64, 128): [skip 1x1 | conv1 dr=-1,0,+1], s-upsample folded ----
    wskip1 = np.zeros((4, S4 * C, S * C), np.float32)
    for s in range(S):
        wskip1[0, (s // 2) * C:(s // 2 + 1) * C, s * C:(s + 1) * C] = convsc_w
    for i, dr in enumerate((-1, 0, 1)):
        for s in range(S):
            for ds in (-1, 0, 1):
                sp = s + ds
                if 0 <= sp < S:
                    s4 = sp // 2
                    wskip1[1 + i, s4 * C:(s4 + 1) * C, s * C:(s + 1) * C] += conv1_w[dr + 1, ds + 1]

    # ---- slab C (3, 128, 128): conv2 banded over s ----
    wc2 = np.zeros((3, S * C, S * C), np.float32)
    for i, dr in enumerate((-1, 0, 1)):
        for s in range(S):
            for ds in (-1, 0, 1):
                sp = s + ds
                if 0 <= sp < S:
                    wc2[i, sp * C:(sp + 1) * C, s * C:(s + 1) * C] = conv2_w[dr + 1, ds + 1]

    # ---- slab D (3, 128, 24): ToRGB conv banded over s, output lanes ordered (c_out, s) ----
    wrgb = np.zeros((3, S * C, IMG_CH * S), np.float32)
    for i, dr in enumerate((-1, 0, 1)):
        for s in range(S):
            for ds in (-1, 0, 1):
                sp = s + ds
                if 0 <= sp < S:
                    for co in range(IMG_CH):
                        wrgb[i, sp * C:(sp + 1) * C, co * S + s] = convrgb_w[dr + 1, ds + 1, :, co]

    # ---- slab E (6, 128): per-channel constants pre-tiled to the lane layout ----
    vec = np.zeros((6, S * C), np.float32)
    vec[0] = np.tile(bn3_g * inv3, S)                      # output BN scale (folded)
    vec[1] = np.tile(bn3_b - bn3_g * bn3_rm * inv3, S)     # output BN shift (folded)
    vec[2] = np.tile(conv1_b, S)
    vec[3] = np.tile(conv2_b, S)
    vec[4] = np.tile(convsc_b, S)
    vec[5, 0:IMG_CH * S] = np.repeat(convrgb_b, S)

    return {
        "shared": shared,
        "rhs": jnp.asarray(rhs),
        "wskip1": jnp.asarray(wskip1),
        "wc2": jnp.asarray(wc2),
        "wrgb": jnp.asarray(wrgb),
        "vec": jnp.asarray(vec),
    }


# ---------------------------------- wrapper -------------------------------------
def wrapper_biggan_forward(key, params, batch_size):
    """WrapperBigGAN.forward(batch_size): sample z, y; run G; global min-max norm."""
    # TODO(synk): torch z_.sample_()/y_.sample_() Distributions replaced by jax.random.
    kz, ky = jax.random.split(key)
    z = jax.random.normal(kz, (batch_size, Z_DIM), jnp.float32)        # z ~ N(0, z_var=1)
    y = jax.random.randint(ky, (batch_size,), 0, N_CLASSES)            # y ~ U{0..999}
    ey = jnp.take(params["shared"], y, axis=0)                         # G.shared(y) (tiny gather)

    # LHS of the fused in-kernel matmul: [z0 | z1 | ey | 1 | 0-pad]  (built once, outside)
    tail = jnp.concatenate(
        [jnp.ones((batch_size, 1), jnp.float32),
         jnp.zeros((batch_size, K_IN - Z_DIM - EMB_DIM - 1), jnp.float32)], axis=1)
    zcat = jnp.concatenate([z, ey, tail], axis=1)                      # (B, 64)

    kernel = make_kernel(batch_size)
    args = (zcat, params["rhs"], params["wskip1"], params["wc2"], params["wrgb"], params["vec"])

    out = pl.pallas_call(
        kernel,
        out_shape=jax.ShapeDtypeStruct((batch_size, IMG_CH * S, R), jnp.float32),
        in_specs=[_VMEM] * len(args),
        out_specs=_VMEM,
    )(*args)

    # (B, 3*S, R) -> NCHW (B, 3, S, R): contiguous split, pure metadata (no XLA transpose)
    return out.reshape(batch_size, IMG_CH, S, R)


# ------------------------------------ main ---------------------------------------
if __name__ == "__main__":
    root = jax.random.PRNGKey(0)
    pkey, fkey = jax.random.split(root)

    params = init_params(pkey)
    fwd = jax.jit(wrapper_biggan_forward, static_argnames=("batch_size",))

    img = fwd(fkey, params, batch_size=BATCH)
    img = jax.block_until_ready(img)

    assert img.shape == (BATCH, IMG_CH, S, R), img.shape
    assert img.dtype == jnp.float32
    assert bool(jnp.all(jnp.isfinite(img)))
    # min-max normalised output must lie in [0, 1]
    assert float(jnp.min(img)) >= -1e-6 and float(jnp.max(img)) <= 1.0 + 1e-6
    print("KERNEL_OK")
</pallas_src>

<mosaic_0001>
module attributes {stable_mosaic.version = 11 : i64} {
  func.func @kernel(%arg0: memref<2x64xf32, #tpu.memory_space<vmem>>, %arg1: memref<64x640xf32, #tpu.memory_space<vmem>>, %arg2: memref<4x64x128xf32, #tpu.memory_space<vmem>>, %arg3: memref<3x128x128xf32, #tpu.memory_space<vmem>>, %arg4: memref<3x128x24xf32, #tpu.memory_space<vmem>>, %arg5: memref<6x128xf32, #tpu.memory_space<vmem>>, %arg6: memref<2x24x8xf32, #tpu.memory_space<vmem>>) attributes {dimension_semantics = [], scalar_prefetch = 0 : i64, scratch_operands = 0 : i64, tpu.core_type = #tpu.core_type<tc>} {
    %c0 = arith.constant 0 : index
    %c0_0 = arith.constant 0 : index
    %0 = vector.load %arg0[%c0, %c0_0] : memref<2x64xf32, #tpu.memory_space<vmem>>, vector<2x64xf32>
    %c0_1 = arith.constant 0 : index
    %c0_2 = arith.constant 0 : index
    %1 = vector.load %arg1[%c0_1, %c0_2] : memref<64x640xf32, #tpu.memory_space<vmem>>, vector<64x640xf32>
    %cst = arith.constant dense<0.000000e+00> : vector<2x640xf32>
    %2 = tpu.matmul %0, %1, %cst {dimension_numbers = #tpu.dot_dimension_numbers<[1], [0], [0], [1], [0, 0, 1, 1], [], []>} : vector<2x64xf32>, vector<64x640xf32>, vector<2x640xf32> -> vector<2x640xf32>
    %3 = vector.extract_strided_slice %2 {offsets = [0, 0], sizes = [2, 256], strides = [1, 1]} : vector<2x640xf32> to vector<2x256xf32>
    %4 = vector.extract_strided_slice %2 {offsets = [0, 256], sizes = [2, 64], strides = [1, 1]} : vector<2x640xf32> to vector<2x64xf32>
    %5 = vector.extract_strided_slice %2 {offsets = [0, 320], sizes = [2, 64], strides = [1, 1]} : vector<2x640xf32> to vector<2x64xf32>
    %6 = vector.extract_strided_slice %2 {offsets = [0, 384], sizes = [2, 128], strides = [1, 1]} : vector<2x640xf32> to vector<2x128xf32>
    %7 = vector.extract_strided_slice %2 {offsets = [0, 512], sizes = [2, 128], strides = [1, 1]} : vector<2x640xf32> to vector<2x128xf32>
    %8 = vector.extract_strided_slice %3 {offsets = [0, 0], sizes = [2, 64], strides = [1, 1]} : vector<2x256xf32> to vector<2x64xf32>
    %9 = vector.shape_cast %8 : vector<2x64xf32> to vector<2x1x64xf32>
    %10 = vector.extract_strided_slice %3 {offsets = [0, 64], sizes = [2, 64], strides = [1, 1]} : vector<2x256xf32> to vector<2x64xf32>
    %11 = vector.shape_cast %10 : vector<2x64xf32> to vector<2x1x64xf32>
    %12 = vector.extract_strided_slice %3 {offsets = [0, 128], sizes = [2, 64], strides = [1, 1]} : vector<2x256xf32> to vector<2x64xf32>
    %13 = vector.shape_cast %12 : vector<2x64xf32> to vector<2x1x64xf32>
    %14 = vector.extract_strided_slice %3 {offsets = [0, 192], sizes = [2, 64], strides = [1, 1]} : vector<2x256xf32> to vector<2x64xf32>
    %15 = vector.shape_cast %14 : vector<2x64xf32> to vector<2x1x64xf32>
    %16 = tpu.concatenate %9, %11, %13, %15 in 1 : vector<2x1x64xf32>, vector<2x1x64xf32>, vector<2x1x64xf32>, vector<2x1x64xf32> -> vector<2x4x64xf32>
    %17 = vector.shape_cast %16 : vector<2x4x64xf32> to vector<8x64xf32>
    %18 = vector.shape_cast %17 : vector<8x64xf32> to vector<8x1x64xf32>
    %19 = vector.shape_cast %18 : vector<8x1x64xf32> to vector<8x1x64xf32>
    %20 = vector.broadcast %19 : vector<8x1x64xf32> to vector<8x2x64xf32>
    %21 = vector.shape_cast %20 : vector<8x2x64xf32> to vector<16x64xf32>
    %22 = vector.shape_cast %4 : vector<2x64xf32> to vector<2x1x64xf32>
    %23 = vector.shape_cast %22 : vector<2x1x64xf32> to vector<2x1x64xf32>
    %24 = vector.broadcast %23 : vector<2x1x64xf32> to vector<2x8x64xf32>
    %25 = vector.shape_cast %24 : vector<2x8x64xf32> to vector<16x64xf32>
    %26 = vector.shape_cast %5 : vector<2x64xf32> to vector<2x1x64xf32>
    %27 = vector.shape_cast %26 : vector<2x1x64xf32> to vector<2x1x64xf32>
    %28 = vector.broadcast %27 : vector<2x1x64xf32> to vector<2x8x64xf32>
    %29 = vector.shape_cast %28 : vector<2x8x64xf32> to vector<16x64xf32>
    %30 = arith.mulf %21, %25 : vector<16x64xf32>
    %31 = arith.addf %30, %29 : vector<16x64xf32>
    %cst_3 = arith.constant 0.000000e+00 : f32
    %32 = vector.broadcast %cst_3 : f32 to vector<16x64xf32>
    %33 = arith.maximumf %31, %32 : vector<16x64xf32>
    %c0_4 = arith.constant 0 : index
    %c0_5 = arith.constant 0 : index
    %c0_6 = arith.constant 0 : index
    %34 = vector.load %arg2[%c0_4, %c0_5, %c0_6] : memref<4x64x128xf32, #tpu.memory_space<vmem>>, vector<1x64x128xf32>
    %35 = vector.shape_cast %34 : vector<1x64x128xf32> to vector<64x128xf32>
    %cst_7 = arith.constant dense<0.000000e+00> : vector<16x128xf32>
    %36 = tpu.matmul %21, %35, %cst_7 {dimension_numbers = #tpu.dot_dimension_numbers<[1], [0], [0], [1], [0, 0, 1, 1], [], []>} : vector<16x64xf32>, vector<64x128xf32>, vector<16x128xf32> -> vector<16x128xf32>
    %c4 = arith.constant 4 : index
    %c0_8 = arith.constant 0 : index
    %37 = vector.load %arg5[%c4, %c0_8] : memref<6x128xf32, #tpu.memory_space<vmem>>, vector<1x128xf32>
    %38 = vector.broadcast %37 : vector<1x128xf32> to vector<16x128xf32>
    %39 = arith.addf %36, %38 : vector<16x128xf32>
    %c2 = arith.constant 2 : index
    %c0_9 = arith.constant 0 : index
    %c0_10 = arith.constant 0 : index
    %40 = vector.load %arg2[%c2, %c0_9, %c0_10] : memref<4x64x128xf32, #tpu.memory_space<vmem>>, vector<1x64x128xf32>
    %41 = vector.shape_cast %40 : vector<1x64x128xf32> to vector<64x128xf32>
    %cst_11 = arith.constant dense<0.000000e+00> : vector<16x128xf32>
    %42 = tpu.matmul %33, %41, %cst_11 {dimension_numbers = #tpu.dot_dimension_numbers<[1], [0], [0], [1], [0, 0, 1, 1], [], []>} : vector<16x64xf32>, vector<64x128xf32>, vector<16x128xf32> -> vector<16x128xf32>
    %43 = tpu.iota {dimensions = array<i32: 0>} : vector<16x64xi32>
    %c7_i32 = arith.constant 7 : i32
    %44 = vector.broadcast %c7_i32 : i32 to vector<16x64xi32>
    %45 = arith.andi %43, %44 : vector<16x64xi32>
    %cst_12 = arith.constant 0.000000e+00 : f32
    %46 = vector.broadcast %cst_12 : f32 to vector<1x64xf32>
    %47 = vector.extract_strided_slice %33 {offsets = [0, 0], sizes = [15, 64], strides = [1, 1]} : vector<16x64xf32> to vector<15x64xf32>
    %48 = tpu.concatenate %46, %47 in 0 : vector<1x64xf32>, vector<15x64xf32> -> vector<16x64xf32>
    %c0_i32 = arith.constant 0 : i32
    %49 = vector.broadcast %c0_i32 : i32 to vector<16x64xi32>
    %50 = arith.cmpi eq, %45, %49 : vector<16x64xi32>
    %cst_13 = arith.constant 0.000000e+00 : f32
    %51 = vector.broadcast %cst_13 : f32 to vector<16x64xf32>
    %52 = arith.select %50, %51, %48 : vector<16x64xi1>, vector<16x64xf32>
    %c1 = arith.constant 1 : index
    %c0_14 = arith.constant 0 : index
    %c0_15 = arith.constant 0 : index
    %53 = vector.load %arg2[%c1, %c0_14, %c0_15] : memref<4x64x128xf32, #tpu.memory_space<vmem>>, vector<1x64x128xf32>
    %54 = vector.shape_cast %53 : vector<1x64x128xf32> to vector<64x128xf32>
    %cst_16 = arith.constant dense<0.000000e+00> : vector<16x128xf32>
    %55 = tpu.matmul %52, %54, %cst_16 {dimension_numbers = #tpu.dot_dimension_numbers<[1], [0], [0], [1], [0, 0, 1, 1], [], []>} : vector<16x64xf32>, vector<64x128xf32>, vector<16x128xf32> -> vector<16x128xf32>
    %56 = arith.addf %42, %55 : vector<16x128xf32>
    %57 = tpu.iota {dimensions = array<i32: 0>} : vector<16x64xi32>
    %c7_i32_17 = arith.constant 7 : i32
    %58 = vector.broadcast %c7_i32_17 : i32 to vector<16x64xi32>
    %59 = arith.andi %57, %58 : vector<16x64xi32>
    %cst_18 = arith.constant 0.000000e+00 : f32
    %60 = vector.broadcast %cst_18 : f32 to vector<1x64xf32>
    %61 = vector.extract_strided_slice %33 {offsets = [1, 0], sizes = [15, 64], strides = [1, 1]} : vector<16x64xf32> to vector<15x64xf32>
    %62 = tpu.concatenate %61, %60 in 0 : vector<15x64xf32>, vector<1x64xf32> -> vector<16x64xf32>
    %c7_i32_19 = arith.constant 7 : i32
    %63 = vector.broadcast %c7_i32_19 : i32 to vector<16x64xi32>
    %64 = arith.cmpi eq, %59, %63 : vector<16x64xi32>
    %cst_20 = arith.constant 0.000000e+00 : f32
    %65 = vector.broadcast %cst_20 : f32 to vector<16x64xf32>
    %66 = arith.select %64, %65, %62 : vector<16x64xi1>, vector<16x64xf32>
    %c3 = arith.constant 3 : index
    %c0_21 = arith.constant 0 : index
    %c0_22 = arith.constant 0 : index
    %67 = vector.load %arg2[%c3, %c0_21, %c0_22] : memref<4x64x128xf32, #tpu.memory_space<vmem>>, vector<1x64x128xf32>
    %68 = vector.shape_cast %67 : vector<1x64x128xf32> to vector<64x128xf32>
    %cst_23 = arith.constant dense<0.000000e+00> : vector<16x128xf32>
    %69 = tpu.matmul %66, %68, %cst_23 {dimension_numbers = #tpu.dot_dimension_numbers<[1], [0], [0], [1], [0, 0, 1, 1], [], []>} : vector<16x64xf32>, vector<64x128xf32>, vector<16x128xf32> -> vector<16x128xf32>
    %70 = arith.addf %56, %69 : vector<16x128xf32>
    %c2_24 = arith.constant 2 : index
    %c0_25 = arith.constant 0 : index
    %71 = vector.load %arg5[%c2_24, %c0_25] : memref<6x128xf32, #tpu.memory_space<vmem>>, vector<1x128xf32>
    %72 = vector.broadcast %71 : vector<1x128xf32> to vector<16x128xf32>
    %73 = arith.addf %70, %72 : vector<16x128xf32>
    %74 = vector.shape_cast %6 : vector<2x128xf32> to vector<2x1x128xf32>
    %75 = vector.shape_cast %74 : vector<2x1x128xf32> to vector<2x1x128xf32>
    %76 = vector.broadcast %75 : vector<2x1x128xf32> to vector<2x8x128xf32>
    %77 = vector.shape_cast %76 : vector<2x8x128xf32> to vector<16x128xf32>
    %78 = vector.shape_cast %7 : vector<2x128xf32> to vector<2x1x128xf32>
    %79 = vector.shape_cast %78 : vector<2x1x128xf32> to vector<2x1x128xf32>
    %80 = vector.broadcast %79 : vector<2x1x128xf32> to vector<2x8x128xf32>
    %81 = vector.shape_cast %80 : vector<2x8x128xf32> to vector<16x128xf32>
    %82 = arith.mulf %73, %77 : vector<16x128xf32>
    %83 = arith.addf %82, %81 : vector<16x128xf32>
    %cst_26 = arith.constant 0.000000e+00 : f32
    %84 = vector.broadcast %cst_26 : f32 to vector<16x128xf32>
    %85 = arith.maximumf %83, %84 : vector<16x128xf32>
    %c1_27 = arith.constant 1 : index
    %c0_28 = arith.constant 0 : index
    %c0_29 = arith.constant 0 : index
    %86 = vector.load %arg3[%c1_27, %c0_28, %c0_29] : memref<3x128x128xf32, #tpu.memory_space<vmem>>, vector<1x128x128xf32>
    %87 = vector.shape_cast %86 : vector<1x128x128xf32> to vector<128x128xf32>
    %cst_30 = arith.constant dense<0.000000e+00> : vector<16x128xf32>
    %88 = tpu.matmul %85, %87, %cst_30 {dimension_numbers = #tpu.dot_dimension_numbers<[1], [0], [0], [1], [0, 0, 1, 1], [], []>} : vector<16x128xf32>, vector<128x128xf32>, vector<16x128xf32> -> vector<16x128xf32>
    %89 = tpu.iota {dimensions = array<i32: 0>} : vector<16x128xi32>
    %c7_i32_31 = arith.constant 7 : i32
    %90 = vector.broadcast %c7_i32_31 : i32 to vector<16x128xi32>
    %91 = arith.andi %89, %90 : vector<16x128xi32>
    %cst_32 = arith.constant 0.000000e+00 : f32
    %92 = vector.broadcast %cst_32 : f32 to vector<1x128xf32>
    %93 = vector.extract_strided_slice %85 {offsets = [0, 0], sizes = [15, 128], strides = [1, 1]} : vector<16x128xf32> to vector<15x128xf32>
    %94 = tpu.concatenate %92, %93 in 0 : vector<1x128xf32>, vector<15x128xf32> -> vector<16x128xf32>
    %c0_i32_33 = arith.constant 0 : i32
    %95 = vector.broadcast %c0_i32_33 : i32 to vector<16x128xi32>
    %96 = arith.cmpi eq, %91, %95 : vector<16x128xi32>
    %cst_34 = arith.constant 0.000000e+00 : f32
    %97 = vector.broadcast %cst_34 : f32 to vector<16x128xf32>
    %98 = arith.select %96, %97, %94 : vector<16x128xi1>, vector<16x128xf32>
    %c0_35 = arith.constant 0 : index
    %c0_36 = arith.constant 0 : index
    %c0_37 = arith.constant 0 : index
    %99 = vector.load %arg3[%c0_35, %c0_36, %c0_37] : memref<3x128x128xf32, #tpu.memory_space<vmem>>, vector<1x128x128xf32>
    %100 = vector.shape_cast %99 : vector<1x128x128xf32> to vector<128x128xf32>
    %cst_38 = arith.constant dense<0.000000e+00> : vector<16x128xf32>
    %101 = tpu.matmul %98, %100, %cst_38 {dimension_numbers = #tpu.dot_dimension_numbers<[1], [0], [0], [1], [0, 0, 1, 1], [], []>} : vector<16x128xf32>, vector<128x128xf32>, vector<16x128xf32> -> vector<16x128xf32>
    %102 = arith.addf %88, %101 : vector<16x128xf32>
    %103 = tpu.iota {dimensions = array<i32: 0>} : vector<16x128xi32>
    %c7_i32_39 = arith.constant 7 : i32
    %104 = vector.broadcast %c7_i32_39 : i32 to vector<16x128xi32>
    %105 = arith.andi %103, %104 : vector<16x128xi32>
    %cst_40 = arith.constant 0.000000e+00 : f32
    %106 = vector.broadcast %cst_40 : f32 to vector<1x128xf32>
    %107 = vector.extract_strided_slice %85 {offsets = [1, 0], sizes = [15, 128], strides = [1, 1]} : vector<16x128xf32> to vector<15x128xf32>
    %108 = tpu.concatenate %107, %106 in 0 : vector<15x128xf32>, vector<1x128xf32> -> vector<16x128xf32>
    %c7_i32_41 = arith.constant 7 : i32
    %109 = vector.broadcast %c7_i32_41 : i32 to vector<16x128xi32>
    %110 = arith.cmpi eq, %105, %109 : vector<16x128xi32>
    %cst_42 = arith.constant 0.000000e+00 : f32
    %111 = vector.broadcast %cst_42 : f32 to vector<16x128xf32>
    %112 = arith.select %110, %111, %108 : vector<16x128xi1>, vector<16x128xf32>
    %c2_43 = arith.constant 2 : index
    %c0_44 = arith.constant 0 : index
    %c0_45 = arith.constant 0 : index
    %113 = vector.load %arg3[%c2_43, %c0_44, %c0_45] : memref<3x128x128xf32, #tpu.memory_space<vmem>>, vector<1x128x128xf32>
    %114 = vector.shape_cast %113 : vector<1x128x128xf32> to vector<128x128xf32>
    %cst_46 = arith.constant dense<0.000000e+00> : vector<16x128xf32>
    %115 = tpu.matmul %112, %114, %cst_46 {dimension_numbers = #tpu.dot_dimension_numbers<[1], [0], [0], [1], [0, 0, 1, 1], [], []>} : vector<16x128xf32>, vector<128x128xf32>, vector<16x128xf32> -> vector<16x128xf32>
    %116 = arith.addf %102, %115 : vector<16x128xf32>
    %c3_47 = arith.constant 3 : index
    %c0_48 = arith.constant 0 : index
    %117 = vector.load %arg5[%c3_47, %c0_48] : memref<6x128xf32, #tpu.memory_space<vmem>>, vector<1x128xf32>
    %118 = vector.broadcast %117 : vector<1x128xf32> to vector<16x128xf32>
    %119 = arith.addf %116, %118 : vector<16x128xf32>
    %120 = arith.addf %119, %39 : vector<16x128xf32>
    %c0_49 = arith.constant 0 : index
    %c0_50 = arith.constant 0 : index
    %121 = vector.load %arg5[%c0_49, %c0_50] : memref<6x128xf32, #tpu.memory_space<vmem>>, vector<1x128xf32>
    %122 = vector.broadcast %121 : vector<1x128xf32> to vector<16x128xf32>
    %123 = arith.mulf %120, %122 : vector<16x128xf32>
    %c1_51 = arith.constant 1 : index
    %c0_52 = arith.constant 0 : index
    %124 = vector.load %arg5[%c1_51, %c0_52] : memref<6x128xf32, #tpu.memory_space<vmem>>, vector<1x128xf32>
    %125 = vector.broadcast %124 : vector<1x128xf32> to vector<16x128xf32>
    %126 = arith.addf %123, %125 : vector<16x128xf32>
    %cst_53 = arith.constant 0.000000e+00 : f32
    %127 = vector.broadcast %cst_53 : f32 to vector<16x128xf32>
    %128 = arith.maximumf %126, %127 : vector<16x128xf32>
    %c1_54 = arith.constant 1 : index
    %c0_55 = arith.constant 0 : index
    %c0_56 = arith.constant 0 : index
    %129 = vector.load %arg4[%c1_54, %c0_55, %c0_56] : memref<3x128x24xf32, #tpu.memory_space<vmem>>, vector<1x128x24xf32>
    %130 = vector.shape_cast %129 : vector<1x128x24xf32> to vector<128x24xf32>
    %cst_57 = arith.constant dense<0.000000e+00> : vector<16x24xf32>
    %131 = tpu.matmul %128, %130, %cst_57 {dimension_numbers = #tpu.dot_dimension_numbers<[1], [0], [0], [1], [0, 0, 1, 1], [], []>} : vector<16x128xf32>, vector<128x24xf32>, vector<16x24xf32> -> vector<16x24xf32>
    %132 = tpu.iota {dimensions = array<i32: 0>} : vector<16x128xi32>
    %c7_i32_58 = arith.constant 7 : i32
    %133 = vector.broadcast %c7_i32_58 : i32 to vector<16x128xi32>
    %134 = arith.andi %132, %133 : vector<16x128xi32>
    %cst_59 = arith.constant 0.000000e+00 : f32
    %135 = vector.broadcast %cst_59 : f32 to vector<1x128xf32>
    %136 = vector.extract_strided_slice %128 {offsets = [0, 0], sizes = [15, 128], strides = [1, 1]} : vector<16x128xf32> to vector<15x128xf32>
    %137 = tpu.concatenate %135, %136 in 0 : vector<1x128xf32>, vector<15x128xf32> -> vector<16x128xf32>
    %c0_i32_60 = arith.constant 0 : i32
    %138 = vector.broadcast %c0_i32_60 : i32 to vector<16x128xi32>
    %139 = arith.cmpi eq, %134, %138 : vector<16x128xi32>
    %cst_61 = arith.constant 0.000000e+00 : f32
    %140 = vector.broadcast %cst_61 : f32 to vector<16x128xf32>
    %141 = arith.select %139, %140, %137 : vector<16x128xi1>, vector<16x128xf32>
    %c0_62 = arith.constant 0 : index
    %c0_63 = arith.constant 0 : index
    %c0_64 = arith.constant 0 : index
    %142 = vector.load %arg4[%c0_62, %c0_63, %c0_64] : memref<3x128x24xf32, #tpu.memory_space<vmem>>, vector<1x128x24xf32>
    %143 = vector.shape_cast %142 : vector<1x128x24xf32> to vector<128x24xf32>
    %cst_65 = arith.constant dense<0.000000e+00> : vector<16x24xf32>
    %144 = tpu.matmul %141, %143, %cst_65 {dimension_numbers = #tpu.dot_dimension_numbers<[1], [0], [0], [1], [0, 0, 1, 1], [], []>} : vector<16x128xf32>, vector<128x24xf32>, vector<16x24xf32> -> vector<16x24xf32>
    %145 = arith.addf %131, %144 : vector<16x24xf32>
    %146 = tpu.iota {dimensions = array<i32: 0>} : vector<16x128xi32>
    %c7_i32_66 = arith.constant 7 : i32
    %147 = vector.broadcast %c7_i32_66 : i32 to vector<16x128xi32>
    %148 = arith.andi %146, %147 : vector<16x128xi32>
    %cst_67 = arith.constant 0.000000e+00 : f32
    %149 = vector.broadcast %cst_67 : f32 to vector<1x128xf32>
    %150 = vector.extract_strided_slice %128 {offsets = [1, 0], sizes = [15, 128], strides = [1, 1]} : vector<16x128xf32> to vector<15x128xf32>
    %151 = tpu.concatenate %150, %149 in 0 : vector<15x128xf32>, vector<1x128xf32> -> vector<16x128xf32>
    %c7_i32_68 = arith.constant 7 : i32
    %152 = vector.broadcast %c7_i32_68 : i32 to vector<16x128xi32>
    %153 = arith.cmpi eq, %148, %152 : vector<16x128xi32>
    %cst_69 = arith.constant 0.000000e+00 : f32
    %154 = vector.broadcast %cst_69 : f32 to vector<16x128xf32>
    %155 = arith.select %153, %154, %151 : vector<16x128xi1>, vector<16x128xf32>
    %c2_70 = arith.constant 2 : index
    %c0_71 = arith.constant 0 : index
    %c0_72 = arith.constant 0 : index
    %156 = vector.load %arg4[%c2_70, %c0_71, %c0_72] : memref<3x128x24xf32, #tpu.memory_space<vmem>>, vector<1x128x24xf32>
    %157 = vector.shape_cast %156 : vector<1x128x24xf32> to vector<128x24xf32>
    %cst_73 = arith.constant dense<0.000000e+00> : vector<16x24xf32>
    %158 = tpu.matmul %155, %157, %cst_73 {dimension_numbers = #tpu.dot_dimension_numbers<[1], [0], [0], [1], [0, 0, 1, 1], [], []>} : vector<16x128xf32>, vector<128x24xf32>, vector<16x24xf32> -> vector<16x24xf32>
    %159 = arith.addf %145, %158 : vector<16x24xf32>
    %c5 = arith.constant 5 : index
    %c0_74 = arith.constant 0 : index
    %160 = vector.load %arg5[%c5, %c0_74] : memref<6x128xf32, #tpu.memory_space<vmem>>, vector<1x24xf32>
    %161 = vector.broadcast %160 : vector<1x24xf32> to vector<16x24xf32>
    %162 = arith.addf %159, %161 : vector<16x24xf32>
    %163 = math.tanh %162 : vector<16x24xf32>
    %164 = vector.shape_cast %163 : vector<16x24xf32> to vector<1x16x24xf32>
    %cst_75 = arith.constant dense<0x7F800000> : vector<1xf32>
    %165 = vector.multi_reduction <minimumf>, %164, %cst_75 [1, 2] : vector<1x16x24xf32> to vector<1xf32>
    %166 = vector.shape_cast %165 : vector<1xf32> to vector<1x1x1xf32>
    %167 = vector.extract %166[0, 0, 0] : f32 from vector<1x1x1xf32>
    %168 = vector.shape_cast %163 : vector<16x24xf32> to vector<1x16x24xf32>
    %cst_76 = arith.constant dense<0xFF800000> : vector<1xf32>
    %169 = vector.multi_reduction <maximumf>, %168, %cst_76 [1, 2] : vector<1x16x24xf32> to vector<1xf32>
    %170 = vector.shape_cast %169 : vector<1xf32> to vector<1x1x1xf32>
    %171 = vector.extract %170[0, 0, 0] : f32 from vector<1x1x1xf32>
    %172 = vector.broadcast %167 : f32 to vector<16x24xf32>
    %173 = arith.subf %163, %172 : vector<16x24xf32>
    %174 = arith.subf %171, %167 : f32
    %175 = vector.broadcast %174 : f32 to vector<16x24xf32>
    %176 = arith.divf %173, %175 : vector<16x24xf32>
    %177 = vector.shape_cast %176 : vector<16x24xf32> to vector<2x8x24xf32>
    %178 = tpu.transpose %177, [0, 2, 1] : vector<2x8x24xf32> -> vector<2x24x8xf32>
    %c0_77 = arith.constant 0 : index
    %c0_78 = arith.constant 0 : index
    %c0_79 = arith.constant 0 : index
    %179 = vector.load %arg6[%c0_77, %c0_78, %c0_79] : memref<2x24x8xf32, #tpu.memory_space<vmem>>, vector<2x24x8xf32>
    tpu.vector_store %arg6[%c0_77, %c0_78, %c0_79], %178 {strides = array<i32>} : memref<2x24x8xf32, #tpu.memory_space<vmem>>, vector<2x24x8xf32>,
    return
  }
}

</mosaic_0001>

<bundles_post_ra>
// kernel: wrapper_biggan_forward.21
= control target key start
LH: loop header
LB: loop body
LE: loop exit
PB: predicated region body
PF: predicated region fallthrough
CT: control target
= control target key end

     0   :  { %s1915_s0 = inlined_call_operand.vmem [shape: f32[2,64], index: 0, kind: input, shape index: {}]   ;;  %s1916_s1 = inlined_call_operand.vmem [shape: f32[64,640], index: 1, kind: input, shape index: {}]   ;;  %s1917_s2 = inlined_call_operand.vmem [shape: f32[4,64,128], index: 2, kind: input, shape index: {}]   ;;  %s1918_s3 = inlined_call_operand.vmem [shape: f32[3,128,128], index: 3, kind: input, shape index: {}]   ;;  %s1919_s4 = inlined_call_operand.vmem [shape: f32[3,128,24], index: 4, kind: input, shape index: {}]   ;;  %s1920_s5 = inlined_call_operand.vmem [shape: f32[6,128], index: 5, kind: input, shape index: {}]   ;;  %s1921_s6 = inlined_call_operand.hbm [shape: f32[2,24,8], index: 6, kind: output, shape index: {}]  }
   0x1   :  { %v60_v0 = vld [vmem:[%s1916_s1 + $0x118] sm:$0xff]  ;;  %v61_v1 = vld [vmem:[%s1916_s1 + $0x120] sm:$0xff]  ;;  %v62_v2 = vld [vmem:[%s1916_s1 + $0x128] sm:$0xff] }
   0x2   :  { %77 = vmatpush.msra.mxu0 %v60_v0  ;;  %97 = vmatpush.msra.mxu3 %v61_v1  ;;  %v55_v3 = vld [vmem:[%s1916_s1 + $0xf0] sm:$0xff]  ;;  %v56_v4 = vld [vmem:[%s1916_s1 + $0xf8] sm:$0xff]  ;;  %v57_v5 = vld [vmem:[%s1916_s1 + $0x100] sm:$0xff] }
   0x3   :  { %117 = vmatpush.msra.mxu2 %v62_v2  ;;  %v50_v6 = vld [vmem:[%s1916_s1 + $0xc8] sm:$0xff]  ;;  %v51_v7 = vld [vmem:[%s1916_s1 + $0xd0] sm:$0xff]  ;;  %v52_v8 = vld [vmem:[%s1916_s1 + $0xd8] sm:$0xff] }
   0x4   :  { %78 = vmatpush.msra.mxu0 %v55_v3  ;;  %98 = vmatpush.msra.mxu3 %v56_v4  ;;  %v45_v9 = vld [vmem:[%s1916_s1 + $0xa0] sm:$0xff]  ;;  %v46_v10 = vld [vmem:[%s1916_s1 + $0xa8] sm:$0xff]  ;;  %v47_v11 = vld [vmem:[%s1916_s1 + $0xb0] sm:$0xff] }
   0x5   :  { %118 = vmatpush.msra.mxu2 %v57_v5  ;;  %v40_v12 = vld [vmem:[%s1916_s1 + $0x78] sm:$0xff]  ;;  %v41_v13 = vld [vmem:[%s1916_s1 + $0x80] sm:$0xff]  ;;  %v42_v14 = vld [vmem:[%s1916_s1 + $0x88] sm:$0xff] }
   0x6   :  { %79 = vmatpush.msra.mxu0 %v50_v6  ;;  %99 = vmatpush.msra.mxu3 %v51_v7  ;;  %v35_v15 = vld [vmem:[%s1916_s1 + $0x50] sm:$0xff]  ;;  %v36_v16 = vld [vmem:[%s1916_s1 + $0x58] sm:$0xff]  ;;  %v37_v17 = vld [vmem:[%s1916_s1 + $0x60] sm:$0xff] }
   0x7   :  { %119 = vmatpush.msra.mxu2 %v52_v8  ;;  %v30_v18 = vld [vmem:[%s1916_s1 + $0x28] sm:$0xff]  ;;  %v31_v19 = vld [vmem:[%s1916_s1 + $0x30] sm:$0xff] }
   0x8   :  { %80 = vmatpush.msra.mxu0 %v45_v9  ;;  %100 = vmatpush.msra.mxu3 %v46_v10 }
   0x9   :  { %120 = vmatpush.msra.mxu2 %v47_v11 }
   0xa   :  { %81 = vmatpush.msra.mxu0 %v40_v12  ;;  %101 = vmatpush.msra.mxu3 %v41_v13 }
   0xb   :  { %121 = vmatpush.msra.mxu2 %v42_v14 }
   0xc   :  { %11 = vsyncpa [#allocation3], 0  ;;  %82 = vmatpush.msra.mxu0 %v35_v15  ;;  %102 = vmatpush.msra.mxu3 %v36_v16  ;;  %v32_v20 = vld [vmem:[%s1916_s1 + $0x38] sm:$0xff]  ;;  %v25_v21 = vld [vmem:[%s1916_s1] sm:$0xff]  ;;  %vm65_vm0 = vcmask 523264   ;;  %vm192_vm1 = vcmask 1040384  }
   0xd   :  { %122 = vmatpush.msra.mxu2 %v37_v17  ;;  %v26_v22 = vld [vmem:[%s1916_s1 + $0x8] sm:$0xff]  ;;  %v27_v23 = vld [vmem:[%s1916_s1 + $0x10] sm:$0xff]  ;;  %v1279_v24 = vld [vmem:[%s1915_s0] sm:$0x3]  ;;  %s1165_s0 = smov 64   ;;  %vm195_vm2 = vcmask 1041408  }
   0xe   :  { %83 = vmatpush.msra.mxu0 %v30_v18  ;;  %103 = vmatpush.msra.mxu3 %v31_v19  ;;  %v298_v43 = vld [vmem:[%s1917_s2 + $0x38] sm:$0xff]  ;;  %v297_v44 = vld [vmem:[%s1917_s2 + $0x30] sm:$0xff]  ;;  %v296_v45 = vld [vmem:[%s1917_s2 + $0x28] sm:$0xff]  ;;  %vm198_vm3 = vcmask 1042432   ;;  %vm493_vm6 = vcmask 1046528   ;;  %vm866_vm13 = vcmask 195584  }
   0xf   :  { %123 = vmatpush.msra.mxu2 %v32_v20  ;;  %330 = vmatpush.msra.mxu1 %v298_v43  ;;  %v295_v46 = vld [vmem:[%s1917_s2 + $0x20] sm:$0xff]  ;;  %v63_v47 = vld [vmem:[%s1916_s1 + $0x130] sm:$0xff]  ;;  %v294_v48 = vld [vmem:[%s1917_s2 + $0x18] sm:$0xff]  ;;  %s1166_s29 = smov [#allocation2]   ;;  %s989_s8 = sshll.u32 %s1921_s6, 4  ;;  %s990_s8 = int_to_ptr.hbm [resolvable:$true] %s989_s8 }
  0x10   :  { %84 = vmatpush.msra.mxu0 %v25_v21  ;;  %104 = vmatpush.msra.mxu3 %v26_v22  ;;  %v58_v49 = vld [vmem:[%s1916_s1 + $0x108] sm:$0xff]  ;;  %v293_v50 = vld [vmem:[%s1917_s2 + $0x10] sm:$0xff]  ;;  %v53_v51 = vld [vmem:[%s1916_s1 + $0xe0] sm:$0xff]  ;;  %s987_s30 = sshll.u32 %s1166_s29, 4  ;;  %s1167_s9 = smov 128   ;;  %s988_s30 = int_to_ptr.vmem [resolvable:$true] %s987_s30 }
  0x11   :  { %124 = vmatpush.msra.mxu2 %v27_v23  ;;  %1001 = vmatmul.msk.f32.vlgmr.msra.gmra.mxu0 %vm65_vm0, %v1279_v24  ;;  %v292_v52 = vld [vmem:[%s1917_s2 + $0x8] sm:$0xff]  ;;  %v48_v53 = vld [vmem:[%s1916_s1 + $0xb8] sm:$0xff]  ;;  %v291_v54 = vld [vmem:[%s1917_s2] sm:$0xff]  ;;  %s1168_s10 = smov 8  }
  0x12   :  { %1002 = vmatmul.msk.f32.vlgmr.msra.gmra.mxu3 %vm65_vm0, %v1279_v24  ;;  %1003 = vmatmul.msk.f32.vlgmr.msra.gmra.mxu2 %vm65_vm0, %v1279_v24  ;;  %v43_v55 = vld [vmem:[%s1916_s1 + $0x90] sm:$0xff]  ;;  %v38_v56 = vld [vmem:[%s1916_s1 + $0x68] sm:$0xff]  ;;  %v1023_v57 = vld [vmem:[%s1917_s2 + $0x78] sm:$0xff] }
  0x13   :  { %331 = vmatpush.msra.mxu1 %v297_v44  ;;  %137 = vmatpush.msrb.mxu3 %v63_v47  ;;  %v33_v61 = vld [vmem:[%s1916_s1 + $0x40] sm:$0xff]  ;;  %v1022_v62 = vld [vmem:[%s1917_s2 + $0x70] sm:$0xff]  ;;  %v28_v63 = vld [vmem:[%s1916_s1 + $0x18] sm:$0xff] }
  0x14   :  { %417 = vmatpush.msrb.mxu2 %v1023_v57  ;;  %v1021_v2 = vld [vmem:[%s1917_s2 + $0x68] sm:$0xff]  ;;  %v1015_v3 = vld [vmem:[%s1917_s2 + $0xb8] sm:$0xff]  ;;  %v1020_v6 = vld [vmem:[%s1917_s2 + $0x60] sm:$0xff] }
  0x15   :  { %332 = vmatpush.msra.mxu1 %v296_v45  ;;  %138 = vmatpush.msrb.mxu3 %v58_v49  ;;  %v1014_v7 = vld [vmem:[%s1917_s2 + $0xb0] sm:$0xff]  ;;  %v1019_v14 = vld [vmem:[%s1917_s2 + $0x58] sm:$0xff]  ;;  %v1013_v15 = vld [vmem:[%s1917_s2 + $0xa8] sm:$0xff] }
  0x16   :  { %418 = vmatpush.msrb.mxu2 %v1022_v62  ;;  %v64_v18 = vld [vmem:[%s1916_s1 + $0x138] sm:$0xff]  ;;  %v1018_v21 = vld [vmem:[%s1917_s2 + $0x50] sm:$0xff]  ;;  %v1012_v22 = vld [vmem:[%s1917_s2 + $0xa0] sm:$0xff] }
  0x17   :  { %333 = vmatpush.msra.mxu1 %v295_v46  ;;  %139 = vmatpush.msrb.mxu3 %v53_v51  ;;  %v59_v23 = vld [vmem:[%s1916_s1 + $0x110] sm:$0xff]  ;;  %v1016_v45 = vld [vmem:[%s1917_s2 + $0x40] sm:$0xff] }
  0x18   :  { %419 = vmatpush.msrb.mxu2 %v1021_v2  ;;  %157 = vmatpush.msrb.mxu0 %v64_v18  ;;  %v39_v57 = vld [vmem:[%s1916_s1 + $0x70] sm:$0xff]  ;;  %v354_v2 = vlaneseq }
  0x19   :  { %334 = vmatpush.msra.mxu1 %v294_v48  ;;  %140 = vmatpush.msrb.mxu3 %v48_v53  ;;  %v49_v48 = vld [vmem:[%s1916_s1 + $0xc0] sm:$0xff] }
  0x1a   :  { %420 = vmatpush.msrb.mxu2 %v1020_v6  ;;  %158 = vmatpush.msrb.mxu0 %v59_v23 }
  0x1b   :  { %335 = vmatpush.msra.mxu1 %v293_v50  ;;  %141 = vmatpush.msrb.mxu3 %v43_v55  ;;  %v44_v55 = vld [vmem:[%s1916_s1 + $0x98] sm:$0xff] }
  0x1c   :  { %421 = vmatpush.msrb.mxu2 %v1019_v14  ;;  %v1033_v14 = vld [vmem:[%s1917_s2 + $0xe8] sm:$0xff] }
  0x1d   :  { %336 = vmatpush.msra.mxu1 %v292_v52  ;;  %142 = vmatpush.msrb.mxu3 %v38_v56  ;;  %v1009_v52 = vld [vmem:[%s1917_s2 + $0x88] sm:$0xff]  ;;  %v1008_v56 = vld [vmem:[%s1917_s2 + $0x80] sm:$0xff] }
  0x1e   :  { %422 = vmatpush.msrb.mxu2 %v1018_v21 }
  0x1f   :  { %337 = vmatpush.msra.mxu1 %v291_v54  ;;  %143 = vmatpush.msrb.mxu3 %v33_v61  ;;  %v34_v61 = vld [vmem:[%s1916_s1 + $0x48] sm:$0xff] }
  0x21   :  { %144 = vmatpush.msrb.mxu3 %v28_v63 }
  0x22   :  { %1004 = vmatmul.msk.f32.vlgmr.msrb.gmra.mxu3 %vm65_vm0, %v1279_v24 }
  0x23   :  { %461 = vmatpush.msra.mxu3 %v1015_v3  ;;  %v29_v3 = vld [vmem:[%s1916_s1 + $0x20] sm:$0xff] }
  0x25   :  { %462 = vmatpush.msra.mxu3 %v1014_v7 }
  0x27   :  { %463 = vmatpush.msra.mxu3 %v1013_v15  ;;  %v1032_v15 = vld [vmem:[%s1917_s2 + $0xe0] sm:$0xff] }
  0x29   :  { %464 = vmatpush.msra.mxu3 %v1012_v22 }
  0x8e   :  { %v1287_v25 = vpop.f32.mrf.mxu0 }
  0x8f   :  { %v174_v26 = vperm.slane %v1287_v25, 0  ;;  %v170_v27 = vrot.slane %v1287_v25, 1 }
  0x91   :  { %176 = vrot.lane.b32.xlu0 %v174_v26, %s1165_s0  ;;  %v175_v30 = vperm.slane %v170_v27, 0 }
  0x95   :  { %v1291_v28 = vpop.f32.mrf.mxu3  ;;  %v126_v29 = vpop.f32.mrf.mxu2 }
  0x96   :  { %v1295_v31 = vperm.slane %v126_v29, 0  ;;  %v182_v32 = vperm.slane %v1291_v28, 0  ;;  %v173_v33 = vrot.slane %v1291_v28, 1  ;;  %v226_v35 = vrot.slane %v126_v29, 1  ;;  %v1017_v28 = vld [vmem:[%s1917_s2 + $0x48] sm:$0xff]  ;;  %v1011_v29 = vld [vmem:[%s1917_s2 + $0x98] sm:$0xff] }
  0x97   :  { %423 = vmatpush.msrb.mxu2 %v1017_v28  ;;  %465 = vmatpush.msra.mxu3 %v1011_v29  ;;  %v1028_v29 = vld [vmem:[%s1917_s2 + $0xc0] sm:$0xff] }
  0x98   :  { %251 = vrot.lane.b32.xlu2 %v1295_v31, %s1165_s0  ;;  %186 = vrot.lane.b32.xlu1 %v182_v32, %s1165_s0  ;;  %v231_v34 = vrot.slane %v1295_v31, 2  ;;  %v232_v36 = vrot.slane %v1295_v31, 4  ;;  %v1304_v37 = vperm.slane %v173_v33, 0  ;;  %v1309_v38 = vperm.slane %v226_v35, 0 }
  0x99   :  { %178 = vrot.lane.b32.xlu0 %v175_v30, %s1165_s0  ;;  %v233_v39 = vrot.slane %v1295_v31, 6  ;;  %424 = vmatpush.msrb.mxu2 %v1016_v45 }
  0x9a   :  { %v234_v40 = vrot.slane %v1309_v38, 2  ;;  %v236_v41 = vrot.slane %v1309_v38, 6  ;;  %v235_v42 = vrot.slane %v1309_v38, 4 }
  0xa0   :  { %253 = vrot.lane.b32.xlu2 %v231_v34, %s1165_s0  ;;  %188 = vrot.lane.b32.xlu1 %v1304_v37, %s1165_s0 }
  0xa1   :  { %255 = vrot.lane.b32.xlu0 %v232_v36, %s1165_s0 }
  0xa8   :  { %259 = vrot.lane.b32.xlu2 %v1309_v38, %s1165_s0  ;;  %257 = vrot.lane.b32.xlu1 %v233_v39, %s1165_s0 }
  0xa9   :  { %261 = vrot.lane.b32.xlu0 %v234_v40, %s1165_s0 }
  0xb0   :  { %265 = vrot.lane.b32.xlu2 %v236_v41, %s1165_s0  ;;  %263 = vrot.lane.b32.xlu1 %v235_v42, %s1165_s0 }
  0xf2   :  { %v252_v59 = vpop.permute.xlu2 %251 }
  0xfa   :  { %v254_v19 = vpop.permute.xlu2 %253 }
 0x102   :  { %v260_v62 = vpop.permute.xlu2 %259 }
 0x103   :  { %v177_v58 = vpop.permute.xlu0 %176 }
 0x104   :  { %v193_v60 = vsel %vm192_vm1, %v1287_v25, %v177_v58 }
 0x105   :  { %v196_v1 = vsel %vm195_vm2, %v193_v60, %v182_v32 }
 0x10a   :  { %v187_v0 = vpop.permute.xlu1 %186 }
 0x10b   :  { %v199_v4 = vsel %vm198_vm3, %v196_v1, %v187_v0  ;;  %v179_v5 = vpop.permute.xlu0 %178 }
 0x10c   :  { %v203_v8 = vrot.slane %v199_v4, 1  ;;  %v205_v9 = vrot.slane %v199_v4, 3  ;;  %v209_v10 = vperm.slane %v199_v4, 0  ;;  %v204_v11 = vrot.slane %v199_v4, 2 }
 0x10d   :  { %v194_v16 = vsel %vm192_vm1, %v170_v27, %v179_v5  ;;  %v1035_v5 = vld [vmem:[%s1917_s2 + $0xf8] sm:$0xff] }
 0x10e   :  { %v210_v12 = vperm.slane %v203_v8, 0  ;;  %v212_v13 = vperm.slane %v205_v9, 0  ;;  %301 = vst [vmem:[#allocation1] ss:$4 sm:$0xff] %v209_v10  ;;  %v211_v17 = vperm.slane %v204_v11, 0  ;;  %v243_v20 = vmul.f32 %v1295_v31, %v209_v10 }
 0x10f   :  { %v197_v27 = vsel %vm195_vm2, %v194_v16, %v1304_v37  ;;  %v1489_v8 = vshrl.u32 %v354_v2, 7  ;;  %v603_v2 = vld [vmem:[%s1918_s3 + $0x50] sm:$0xff]  ;;  %vm976_vm2 = vcmask 64512  }
 0x110   :  { %303 = vst [vmem:[#allocation1 + $0x1] ss:$4 sm:$0xff] %v210_v12  ;;  %v244_v25 = vmul.f32 %v231_v34, %v210_v12  ;;  %v245_v32 = vmul.f32 %v232_v36, %v211_v17  ;;  %v54_v34 = vld [vmem:[%s1916_s1 + $0xe8] sm:$0xff]  ;;  %v275_v35 = vadd.f32 %v252_v59, %v243_v20  ;;  %v1010_v36 = vld [vmem:[%s1917_s2 + $0x90] sm:$0xff]  ;;  %v246_v60 = vmul.f32 %v233_v39, %v212_v13 }
 0x111   :  { %307 = vst [vmem:[#allocation1 + $0x3] ss:$4 sm:$0xff] %v212_v13  ;;  %159 = vmatpush.msrb.mxu0 %v54_v34  ;;  %466 = vmatpush.msra.mxu3 %v1010_v36  ;;  %v357_v16 = vand.u32 7, %v1489_v8  ;;  %v1030_v20 = vld [vmem:[%s1917_s2 + $0xd0] sm:$0xff] }
 0x112   :  { %v189_v26 = vpop.permute.xlu1 %188  ;;  %305 = vst [vmem:[#allocation1 + $0x2] ss:$4 sm:$0xff] %v211_v17  ;;  %v276_v49 = vadd.f32 %v254_v19, %v244_v25  ;;  %v1461_v58 = vmax.f32 %v275_v35, 0.0  ;;  %v1029_v25 = vld [vmem:[%s1917_s2 + $0xc8] sm:$0xff] }
 0x113   :  { %v200_v30 = vsel %vm198_vm3, %v197_v27, %v189_v26  ;;  %v256_v33 = vpop.permute.xlu0 %255  ;;  %160 = vmatpush.msrb.mxu0 %v49_v48  ;;  %467 = vmatpush.msra.mxu3 %v1009_v52  ;;  %vm1512_vm4 = vcmp.eq.s32.totalorder %v357_v16, 0  ;;  %vm1544_vm7 = vcmp.eq.s32.totalorder %v357_v16, 7  ;;  %v598_v16 = vld [vmem:[%s1918_s3 + $0x28] sm:$0xff] }
 0x114   :  { %v207_v37 = vrot.slane %v200_v30, 2  ;;  %v208_v43 = vrot.slane %v200_v30, 3  ;;  %v213_v44 = vperm.slane %v200_v30, 0  ;;  %v277_v46 = vadd.f32 %v256_v33, %v245_v32  ;;  %vm1054_vm9 = vmneg %vm1512_vm4 }
 0x115   :  { %v206_v47 = vrot.slane %v200_v30, 1  ;;  %161 = vmatpush.msrb.mxu0 %v44_v55  ;;  %468 = vmatpush.msra.mxu3 %v1008_v56  ;;  %v1468_v63 = vmax.f32 %v276_v49, 0.0  ;;  %v356_v30 = vadd.s32 8, %v1489_v8  ;;  %v1053_v55 = vld [vmem:[%s1918_s3 + $0xf8] sm:$0xff]  ;;  %v1052_v56 = vld [vmem:[%s1918_s3 + $0xf0] sm:$0xff]  ;;  %v1070_v8 = vld [vmem:[%s1918_s3 + $0x160] sm:$0xff] }
 0x116   :  { %v215_v50 = vperm.slane %v207_v37, 0  ;;  %v216_v51 = vperm.slane %v208_v43, 0  ;;  %309 = vst [vmem:[#allocation1 + $0x20] ss:$4 sm:$0xff] %v213_v44  ;;  %v1450_v53 = vmax.f32 %v277_v46, 0.0  ;;  %v247_v4 = vmul.f32 %v1309_v38, %v213_v44  ;;  %v1031_v38 = vld [vmem:[%s1917_s2 + $0xd8] sm:$0xff]  ;;  %632 = vmatpush.msra.mxu2 %v1053_v55  ;;  %vm1074_vm11 = vmneg %vm1544_vm7 }
 0x117   :  { %v214_v54 = vperm.slane %v206_v47, 0  ;;  %162 = vmatpush.msrb.mxu0 %v39_v57  ;;  %v358_v32 = vand.u32 7, %v356_v30  ;;  %v608_v57 = vld [vmem:[%s1918_s3 + $0x78] sm:$0xff]  ;;  %v1132_v37 = vld [vmem:[%s1920_s5 + $0x5] ss:$0 sm:$0xff] }
 0x118   :  { %313 = vst [vmem:[#allocation1 + $0x22] ss:$4 sm:$0xff] %v215_v50  ;;  %v279_v9 = vadd.f32 %v260_v62, %v247_v4  ;;  %v250_v10 = vmul.f32 %v236_v41, %v216_v51  ;;  %v249_v13 = vmul.f32 %v235_v42, %v215_v50  ;;  %633 = vmatpush.msra.mxu2 %v1052_v56  ;;  %v1049_v62 = vld [vmem:[%s1918_s3 + $0xd8] sm:$0xff]  ;;  %v1046_v4 = vld [vmem:[%s1918_s3 + $0xc0] sm:$0xff] }
 0x119   :  { %315 = vst [vmem:[#allocation1 + $0x23] ss:$4 sm:$0xff] %v216_v51  ;;  %v316_v59 = vld.sshfl [vmem:[#allocation1] sm:$0xff pattern:$0x73625140]  ;;  %v248_v31 = vmul.f32 %v234_v40, %v214_v54  ;;  %163 = vmatpush.msrb.mxu0 %v34_v61  ;;  %v1034_v40 = vld [vmem:[%s1917_s2 + $0xf0] sm:$0xff]  ;;  %609 = vmatpush.msrb.mxu1 %v608_v57 }
 0x11a   :  { %371 = vst [vmem:[#allocation1 + $0x2] ss:$4 sm:$0xff] %v1450_v53  ;;  %1006 = vmatmul.msk.f32.vlgmr.msra.gmra.mxu1 %vm65_vm0, %v316_v59  ;;  %v258_v0 = vpop.permute.xlu1 %257  ;;  %v287_v17 = vmax.f32 %v279_v9, 0.0  ;;  %vm1533_vm5 = vcmp.eq.s32.totalorder %v358_v32, 0  ;;  %vm1553_vm8 = vcmp.eq.s32.totalorder %v358_v32, 7  ;;  %v607_v59 = vld [vmem:[%s1918_s3 + $0x70] sm:$0xff] }
 0x11b   :  { %367 = vst [vmem:[#allocation1] ss:$4 sm:$0xff] %v1461_v58  ;;  %v278_v1 = vadd.f32 %v258_v0, %v246_v60  ;;  %v262_v39 = vpop.permute.xlu0 %261  ;;  %164 = vmatpush.msrb.mxu0 %v29_v3  ;;  %610 = vmatpush.msrb.mxu1 %v607_v59  ;;  %v1050_v60 = vld [vmem:[%s1918_s3 + $0xe0] sm:$0xff]  ;;  %v606_v61 = vld [vmem:[%s1918_s3 + $0x68] sm:$0xff]  ;;  %v1048_v0 = vld [vmem:[%s1918_s3 + $0xd0] sm:$0xff] }
 0x11c   :  { %369 = vst [vmem:[#allocation1 + $0x1] ss:$4 sm:$0xff] %v1468_v63  ;;  %v280_v7 = vadd.f32 %v262_v39, %v248_v31  ;;  %1005 = vmatmul.msk.f32.vlgmr.msrb.gmra.mxu0 %vm65_vm0, %v1279_v24  ;;  %v266_v24 = vpop.permute.xlu2 %265  ;;  %v1073_v31 = vld [vmem:[%s1918_s3 + $0x178] sm:$0xff]  ;;  %v1047_v39 = vld [vmem:[%s1918_s3 + $0xc8] sm:$0xff]  ;;  %v1072_v3 = vld [vmem:[%s1918_s3 + $0x170] sm:$0xff] }
 0x11d   :  { %v1483_v6 = vmax.f32 %v278_v1, 0.0  ;;  %311 = vst [vmem:[#allocation1 + $0x21] ss:$4 sm:$0xff] %v214_v54  ;;  %527 = vmatpush.msra.mxu0 %v1035_v5  ;;  %v282_v42 = vadd.f32 %v266_v24, %v250_v10  ;;  %611 = vmatpush.msrb.mxu1 %v606_v61  ;;  %v604_v1 = vld [vmem:[%s1918_s3 + $0x58] sm:$0xff]  ;;  %v602_v5 = vld [vmem:[%s1918_s3 + $0x48] sm:$0xff]  ;;  %v1044_v9 = vld [vmem:[%s1918_s3 + $0xb0] sm:$0xff] }
 0x11e   :  { %v288_v11 = vmax.f32 %v280_v7, 0.0  ;;  %680 = vmatpush.msrb.mxu3 %v1073_v31  ;;  %v1045_v7 = vld [vmem:[%s1918_s3 + $0xb8] sm:$0xff]  ;;  %v1067_v24 = vld [vmem:[%s1918_s3 + $0x148] sm:$0xff]  ;;  %v1060_v32 = vld [vmem:[%s1918_s3 + $0x110] sm:$0xff] }
 0x11f   :  { %373 = vst [vmem:[#allocation1 + $0x3] ss:$4 sm:$0xff] %v1483_v6  ;;  %528 = vmatpush.msra.mxu0 %v1034_v40  ;;  %v290_v26 = vmax.f32 %v282_v42, 0.0  ;;  %v601_v40 = vld [vmem:[%s1918_s3 + $0x40] sm:$0xff]  ;;  %v600_v10 = vld [vmem:[%s1918_s3 + $0x38] sm:$0xff]  ;;  %vm1056_vm10 = vmneg %vm1533_vm5 }
 0x120   :  { %681 = vmatpush.msrb.mxu3 %v1072_v3  ;;  %v596_v42 = vld [vmem:[%s1918_s3 + $0x18] sm:$0xff]  ;;  %vm1076_vm12 = vmneg %vm1553_vm8 }
 0x121   :  { %529 = vmatpush.msra.mxu0 %v1033_v14  ;;  %v1068_v14 = vld [vmem:[%s1918_s3 + $0x150] sm:$0xff]  ;;  %v1061_v30 = vld [vmem:[%s1918_s3 + $0x118] sm:$0xff] }
 0x122   :  { %v264_v12 = vpop.permute.xlu1 %263 }
 0x123   :  { %v281_v18 = vadd.f32 %v264_v12, %v249_v13  ;;  %530 = vmatpush.msra.mxu0 %v1032_v15  ;;  %v1043_v12 = vld [vmem:[%s1918_s3 + $0xa8] sm:$0xff]  ;;  %v599_v13 = vld [vmem:[%s1918_s3 + $0x30] sm:$0xff]  ;;  %v1042_v15 = vld [vmem:[%s1918_s3 + $0xa0] sm:$0xff] }
 0x124   :  { %v317_v41 = vld.sshfl [vmem:[#allocation1 + $0x20] sm:$0xff pattern:$0x73625140] }
 0x125   :  { %377 = vst [vmem:[#allocation1 + $0x21] ss:$4 sm:$0xff] %v288_v11  ;;  %1007 = vmatmul.msk.f32.gmra.mxu1 %vm65_vm0, %v317_v41  ;;  %531 = vmatpush.msra.mxu0 %v1031_v38  ;;  %v289_v23 = vmax.f32 %v281_v18, 0.0  ;;  %v597_v41 = vld [vmem:[%s1918_s3 + $0x20] sm:$0xff]  ;;  %v1040_v38 = vld [vmem:[%s1918_s3 + $0x90] sm:$0xff] }
 0x126   :  { %v382_v19 = vld.sshfl [vmem:[#allocation1] sm:$0xff pattern:$0x73625140]  ;;  %375 = vst [vmem:[#allocation1 + $0x20] ss:$4 sm:$0xff] %v287_v17 }
 0x127   :  { %438 = vst [vmem:[#allocation1 + $0x3] ss:$4 sm:$0xff] %v1483_v6  ;;  %v384_v21 = vrot.slane %v382_v19, 7  ;;  %532 = vmatpush.msra.mxu0 %v1030_v20  ;;  %v1066_v18 = vld [vmem:[%s1918_s3 + $0x140] sm:$0xff]  ;;  %v1065_v19 = vld [vmem:[%s1918_s3 + $0x138] sm:$0xff]  ;;  %v1039_v20 = vld [vmem:[%s1918_s3 + $0x88] sm:$0xff] }
 0x128   :  { %432 = vst [vmem:[#allocation1] ss:$4 sm:$0xff] %v1461_v58 }
 0x129   :  { %434 = vst [vmem:[#allocation1 + $0x1] ss:$4 sm:$0xff] %v1468_v63  ;;  %v389_v27 = vsel %vm192_vm1, 0.0, %v384_v21  ;;  %533 = vmatpush.msra.mxu0 %v1029_v25  ;;  %v1038_v25 = vld [vmem:[%s1918_s3 + $0x80] sm:$0xff] }
 0x12a   :  { %436 = vst [vmem:[#allocation1 + $0x2] ss:$4 sm:$0xff] %v1450_v53  ;;  %v392_v28 = vsel %vm1512_vm4, 0.0, %v389_v27  ;;  %v1063_v27 = vld [vmem:[%s1918_s3 + $0x128] sm:$0xff] }
 0x12b   :  { %381 = vst [vmem:[#allocation1 + $0x23] ss:$4 sm:$0xff] %v290_v26  ;;  %1024 = vmatmul.msk.f32.vlgmr.msrb.gmra.mxu2 %vm65_vm0, %v392_v28  ;;  %534 = vmatpush.msra.mxu0 %v1028_v29  ;;  %v593_v28 = vld [vmem:[%s1918_s3] sm:$0xff] }
 0x12c   :  { %379 = vst [vmem:[#allocation1 + $0x22] ss:$4 sm:$0xff] %v289_v23  ;;  %v1062_v29 = vld [vmem:[%s1918_s3 + $0x120] sm:$0xff] }
 0x131   :  { %v447_v33 = vld.sshfl [vmem:[#allocation1] sm:$0xff pattern:$0x73625140] }
 0x132   :  { %1026 = vmatmul.msk.f32.vlgmr.msra.gmra.mxu3 %vm65_vm0, %v447_v33  ;;  %476 = vst [vmem:[#allocation1] ss:$4 sm:$0xff] %v1461_v58  ;;  %v1051_v58 = vld [vmem:[%s1918_s3 + $0xe8] sm:$0xff]  ;;  %v146_v33 = vpop.f32.mrf.mxu3 }
 0x133   :  { %v383_v34 = vld.sshfl [vmem:[#allocation1 + $0x20] sm:$0xff pattern:$0x73625140]  ;;  %478 = vst [vmem:[#allocation1 + $0x1] ss:$4 sm:$0xff] %v1468_v63  ;;  %634 = vmatpush.msra.mxu2 %v1051_v58 }
 0x134   :  { %444 = vst [vmem:[#allocation1 + $0x22] ss:$4 sm:$0xff] %v289_v23  ;;  %v385_v35 = vrot.slane %v383_v34, 7  ;;  %v605_v63 = vld [vmem:[%s1918_s3 + $0x60] sm:$0xff]  ;;  %v1059_v34 = vld [vmem:[%s1918_s3 + $0x108] sm:$0xff] }
 0x135   :  { %440 = vst [vmem:[#allocation1 + $0x20] ss:$4 sm:$0xff] %v287_v17  ;;  %635 = vmatpush.msra.mxu2 %v1050_v60  ;;  %612 = vmatpush.msrb.mxu1 %v605_v63  ;;  %v549_v60 = vrot.slane %v146_v33, 1 }
 0x136   :  { %442 = vst [vmem:[#allocation1 + $0x21] ss:$4 sm:$0xff] %v288_v11  ;;  %v386_v43 = vsel %vm192_vm1, %v384_v21, %v385_v35  ;;  %v595_v21 = vld [vmem:[%s1918_s3 + $0x10] sm:$0xff]  ;;  %v1058_v35 = vld [vmem:[%s1918_s3 + $0x100] sm:$0xff] }
 0x137   :  { %446 = vst [vmem:[#allocation1 + $0x23] ss:$4 sm:$0xff] %v290_v26  ;;  %v393_v44 = vsel %vm1533_vm5, 0.0, %v386_v43  ;;  %636 = vmatpush.msra.mxu2 %v1049_v62  ;;  %613 = vmatpush.msrb.mxu1 %v604_v1 }
 0x138   :  { %480 = vst [vmem:[#allocation1 + $0x2] ss:$4 sm:$0xff] %v1450_v53  ;;  %1025 = vmatmul.msk.f32.gmra.mxu2 %vm65_vm0, %v393_v44 }
 0x139   :  { %482 = vst [vmem:[#allocation1 + $0x3] ss:$4 sm:$0xff] %v1483_v6  ;;  %637 = vmatpush.msra.mxu2 %v1048_v0  ;;  %614 = vmatpush.msrb.mxu1 %v603_v2  ;;  %v1071_v6 = vld [vmem:[%s1918_s3 + $0x168] sm:$0xff] }
 0x13a   :  { %682 = vmatpush.msrb.mxu3 %v1071_v6 }
 0x13b   :  { %638 = vmatpush.msra.mxu2 %v1047_v39  ;;  %615 = vmatpush.msrb.mxu1 %v602_v5  ;;  %v551_v39 = vperm.slane %v549_v60, 0  ;;  %v1103_v60 = vld [vmem:[%s1919_s4 + $0x128] sm:$0xff] }
 0x13c   :  { %683 = vmatpush.msrb.mxu3 %v1070_v8 }
 0x13d   :  { %639 = vmatpush.msra.mxu2 %v1046_v4  ;;  %616 = vmatpush.msrb.mxu1 %v601_v40 }
 0x13e   :  { %v448_v45 = vld.sshfl [vmem:[#allocation1 + $0x20] sm:$0xff pattern:$0x73625140] }
 0x13f   :  { %1027 = vmatmul.msk.f32.gmra.mxu3 %vm65_vm0, %v448_v45  ;;  %484 = vst [vmem:[#allocation1 + $0x20] ss:$4 sm:$0xff] %v287_v17  ;;  %640 = vmatpush.msra.mxu2 %v1045_v7  ;;  %v1041_v17 = vld [vmem:[%s1918_s3 + $0x98] sm:$0xff] }
 0x140   :  { %486 = vst [vmem:[#allocation1 + $0x21] ss:$4 sm:$0xff] %v288_v11  ;;  %v491_v36 = vld.sshfl [vmem:[#allocation1] sm:$0xff pattern:$0x73625140]  ;;  %v1069_v11 = vld [vmem:[%s1918_s3 + $0x158] sm:$0xff]  ;;  %617 = vmatpush.msrb.mxu1 %v600_v10 }
 0x141   :  { %488 = vst [vmem:[#allocation1 + $0x22] ss:$4 sm:$0xff] %v289_v23  ;;  %v494_v47 = vrot.slane %v491_v36, 1  ;;  %641 = vmatpush.msra.mxu2 %v1044_v9  ;;  %684 = vmatpush.msrb.mxu3 %v1069_v11  ;;  %v1064_v23 = vld [vmem:[%s1918_s3 + $0x130] sm:$0xff]  ;;  %v1093_v36 = vld [vmem:[%s1919_s4 + $0xf8] sm:$0xff] }
 0x142   :  { %490 = vst [vmem:[#allocation1 + $0x23] ss:$4 sm:$0xff] %v290_v26  ;;  %618 = vmatpush.msrb.mxu1 %v599_v13  ;;  %v594_v26 = vld [vmem:[%s1918_s3 + $0x8] sm:$0xff] }
 0x143   :  { %642 = vmatpush.msra.mxu2 %v1043_v12  ;;  %685 = vmatpush.msrb.mxu3 %v1068_v14  ;;  %v1091_v14 = vld [vmem:[%s1919_s4 + $0xe8] sm:$0xff] }
 0x144   :  { %619 = vmatpush.msrb.mxu1 %v598_v16  ;;  %v1090_v16 = vld [vmem:[%s1919_s4 + $0xe0] sm:$0xff] }
 0x145   :  { %643 = vmatpush.msra.mxu2 %v1042_v15  ;;  %686 = vmatpush.msrb.mxu3 %v1067_v24  ;;  %v762_v15 = vld [vmem:[%s1919_s4 + $0x70] sm:$0xff]  ;;  %v761_v24 = vld [vmem:[%s1919_s4 + $0x68] sm:$0xff] }
 0x146   :  { %620 = vmatpush.msrb.mxu1 %v597_v41  ;;  %v760_v41 = vld [vmem:[%s1919_s4 + $0x60] sm:$0xff] }
 0x147   :  { %644 = vmatpush.msra.mxu2 %v1041_v17  ;;  %687 = vmatpush.msrb.mxu3 %v1066_v18  ;;  %v1089_v17 = vld [vmem:[%s1919_s4 + $0xd8] sm:$0xff]  ;;  %v1088_v18 = vld [vmem:[%s1919_s4 + $0xd0] sm:$0xff] }
 0x148   :  { %621 = vmatpush.msrb.mxu1 %v596_v42  ;;  %v1113_v42 = vld [vmem:[%s1919_s4 + $0x178] sm:$0xff] }
 0x149   :  { %v492_v46 = vld.sshfl [vmem:[#allocation1 + $0x20] sm:$0xff pattern:$0x73625140]  ;;  %645 = vmatpush.msra.mxu2 %v1040_v38  ;;  %688 = vmatpush.msrb.mxu3 %v1065_v19  ;;  %v759_v38 = vld [vmem:[%s1919_s4 + $0x58] sm:$0xff]  ;;  %v1087_v19 = vld [vmem:[%s1919_s4 + $0xc8] sm:$0xff] }
 0x14a   :  { %v495_v48 = vrot.slane %v492_v46, 1  ;;  %622 = vmatpush.msrb.mxu1 %v595_v21  ;;  %v1092_v46 = vld [vmem:[%s1919_s4 + $0xf0] sm:$0xff] }
 0x14b   :  { %646 = vmatpush.msra.mxu2 %v1039_v20  ;;  %689 = vmatpush.msrb.mxu3 %v1064_v23  ;;  %v758_v20 = vld [vmem:[%s1919_s4 + $0x50] sm:$0xff]  ;;  %v1086_v23 = vld [vmem:[%s1919_s4 + $0xc0] sm:$0xff] }
 0x14c   :  { %v496_v50 = vsel %vm493_vm6, %v494_v47, %v495_v48  ;;  %v499_v52 = vsel %vm493_vm6, %v495_v48, 0.0  ;;  %623 = vmatpush.msrb.mxu1 %v594_v26  ;;  %v763_v47 = vld [vmem:[%s1919_s4 + $0x78] sm:$0xff]  ;;  %v1112_v21 = vld [vmem:[%s1919_s4 + $0x170] sm:$0xff]  ;;  %v1111_v26 = vld [vmem:[%s1919_s4 + $0x168] sm:$0xff] }
 0x14d   :  { %v502_v51 = vsel %vm1544_vm7, 0.0, %v496_v50  ;;  %v503_v54 = vsel %vm1553_vm8, 0.0, %v499_v52  ;;  %647 = vmatpush.msra.mxu2 %v1038_v25  ;;  %690 = vmatpush.msrb.mxu3 %v1063_v27  ;;  %v1128_v50 = vld [vmem:[%s1920_s5 + $0x2] ss:$0 sm:$0xff]  ;;  %v757_v25 = vld [vmem:[%s1919_s4 + $0x48] sm:$0xff]  ;;  %v1085_v27 = vld [vmem:[%s1919_s4 + $0xb8] sm:$0xff] }
 0x14e   :  { %1036 = vmatmul.msk.f32.vlgmr.msra.gmra.mxu0 %vm65_vm0, %v502_v51  ;;  %624 = vmatpush.msrb.mxu1 %v593_v28  ;;  %v756_v28 = vld [vmem:[%s1919_s4 + $0x40] sm:$0xff] }
 0x14f   :  { %691 = vmatpush.msrb.mxu3 %v1062_v29  ;;  %764 = vmatpush.msrb.mxu0 %v763_v47  ;;  %v1110_v29 = vld [vmem:[%s1919_s4 + $0x160] sm:$0xff] }
 0x150   :  { %787 = vmatpush.msra.mxu1 %v1093_v36  ;;  %835 = vmatpush.msrb.mxu2 %v1113_v42  ;;  %v1107_v36 = vld [vmem:[%s1919_s4 + $0x148] sm:$0xff]  ;;  %v752_v47 = vld [vmem:[%s1919_s4 + $0x20] sm:$0xff] }
 0x151   :  { %692 = vmatpush.msrb.mxu3 %v1061_v30  ;;  %765 = vmatpush.msrb.mxu0 %v762_v15  ;;  %v1084_v30 = vld [vmem:[%s1919_s4 + $0xb0] sm:$0xff] }
 0x152   :  { %788 = vmatpush.msra.mxu1 %v1092_v46  ;;  %836 = vmatpush.msrb.mxu2 %v1112_v21  ;;  %v1081_v46 = vld [vmem:[%s1919_s4 + $0x98] sm:$0xff] }
 0x153   :  { %693 = vmatpush.msrb.mxu3 %v1060_v32  ;;  %766 = vmatpush.msrb.mxu0 %v761_v24  ;;  %v755_v32 = vld [vmem:[%s1919_s4 + $0x38] sm:$0xff] }
 0x154   :  { %789 = vmatpush.msra.mxu1 %v1091_v14  ;;  %837 = vmatpush.msrb.mxu2 %v1111_v26 }
 0x155   :  { %694 = vmatpush.msrb.mxu3 %v1059_v34  ;;  %767 = vmatpush.msrb.mxu0 %v760_v41  ;;  %v1083_v34 = vld [vmem:[%s1919_s4 + $0xa8] sm:$0xff] }
 0x156   :  { %1037 = vmatmul.msk.f32.gmra.mxu0 %vm65_vm0, %v503_v54  ;;  %v550_v54 = vperm.slane %v146_v33, 0  ;;  %790 = vmatpush.msra.mxu1 %v1090_v16  ;;  %v1109_v33 = vld [vmem:[%s1919_s4 + $0x158] sm:$0xff] }
 0x157   :  { %695 = vmatpush.msrb.mxu3 %v1058_v35  ;;  %768 = vmatpush.msrb.mxu0 %v759_v38  ;;  %v754_v35 = vld [vmem:[%s1919_s4 + $0x30] sm:$0xff] }
 0x158   :  { %791 = vmatpush.msra.mxu1 %v1089_v17  ;;  %838 = vmatpush.msrb.mxu2 %v1110_v29 }
 0x159   :  { %769 = vmatpush.msrb.mxu0 %v758_v20 }
 0x15a   :  { %792 = vmatpush.msra.mxu1 %v1088_v18  ;;  %839 = vmatpush.msrb.mxu2 %v1109_v33 }
 0x15b   :  { %770 = vmatpush.msrb.mxu0 %v757_v25 }
 0x15c   :  { %793 = vmatpush.msra.mxu1 %v1087_v19 }
 0x15d   :  { %771 = vmatpush.msrb.mxu0 %v756_v28 }
 0x15e   :  { %794 = vmatpush.msra.mxu1 %v1086_v23 }
 0x15f   :  { %772 = vmatpush.msrb.mxu0 %v755_v32 }
 0x160   :  { %795 = vmatpush.msra.mxu1 %v1085_v27 }
 0x161   :  { %773 = vmatpush.msrb.mxu0 %v754_v35 }
 0x162   :  { %796 = vmatpush.msra.mxu1 %v1084_v30 }
 0x164   :  { %797 = vmatpush.msra.mxu1 %v1083_v34 }
 0x199   :  { %v166_v43 = vpop.f32.mrf.mxu0 }
 0x19a   :  { %v556_v57 = vperm.slane %v166_v43, 0  ;;  %v555_v0 = vrot.slane %v166_v43, 1  ;;  %v1108_v43 = vld [vmem:[%s1919_s4 + $0x150] sm:$0xff] }
 0x19b   :  { %840 = vmatpush.msrb.mxu2 %v1108_v43 }
 0x19c   :  { %v557_v4 = vperm.slane %v555_v0, 0  ;;  %v1100_v0 = vld [vmem:[%s1919_s4 + $0x110] sm:$0xff] }
 0x19d   :  { %841 = vmatpush.msrb.mxu2 %v1107_v36 }
 0x1ae   :  { %v426_v45 = vpop.f32.mrf.mxu2 }
 0x1b5   :  { %v470_v44 = vpop.f32.mrf.mxu3 }
 0x1b6   :  { %v471_v48 = vadd.f32 %v470_v44, %v426_v45  ;;  %v1082_v44 = vld [vmem:[%s1919_s4 + $0xa0] sm:$0xff]  ;;  %v753_v45 = vld [vmem:[%s1919_s4 + $0x28] sm:$0xff] }
 0x1b7   :  { %798 = vmatpush.msra.mxu1 %v1082_v44  ;;  %774 = vmatpush.msrb.mxu0 %v753_v45 }
 0x1b9   :  { %799 = vmatpush.msra.mxu1 %v1081_v46  ;;  %775 = vmatpush.msrb.mxu0 %v752_v47 }
 0x1bb   :  { %v429_v59 = vpop.f32.mrf.mxu2 }
 0x1c2   :  { %v473_v56 = vpop.f32.mrf.mxu3 }
 0x1c3   :  { %v474_v61 = vadd.f32 %v473_v56, %v429_v59  ;;  %v750_v56 = vld [vmem:[%s1919_s4 + $0x10] sm:$0xff]  ;;  %v749_v59 = vld [vmem:[%s1919_s4 + $0x8] sm:$0xff] }
 0x1cb   :  { %v536_v51 = vpop.f32.mrf.mxu0 }
 0x1cc   :  { %v542_v52 = vadd.f32 %v536_v51, %v471_v48  ;;  %v1106_v48 = vld [vmem:[%s1919_s4 + $0x140] sm:$0xff]  ;;  %v751_v51 = vld [vmem:[%s1919_s4 + $0x18] sm:$0xff] }
 0x1cd   :  { %842 = vmatpush.msrb.mxu2 %v1106_v48  ;;  %776 = vmatpush.msrb.mxu0 %v751_v51 }
 0x1ce   :  { %v546_v55 = vadd.f32 %v1128_v50, %v542_v52  ;;  %v1105_v52 = vld [vmem:[%s1919_s4 + $0x138] sm:$0xff] }
 0x1cf   :  { %843 = vmatpush.msrb.mxu2 %v1105_v52  ;;  %777 = vmatpush.msrb.mxu0 %v750_v56 }
 0x1d0   :  { %v560_v58 = vmul.f32 %v550_v54, %v546_v55  ;;  %v1079_v54 = vld [vmem:[%s1919_s4 + $0x88] sm:$0xff]  ;;  %v339_v55 = vpop.f32.mrf.mxu1 }
 0x1d1   :  { %778 = vmatpush.msrb.mxu0 %v749_v59 }
 0x1d2   :  { %v562_v62 = vadd.f32 %v560_v58, %v556_v57  ;;  %v1104_v57 = vld [vmem:[%s1919_s4 + $0x130] sm:$0xff]  ;;  %v1078_v58 = vld [vmem:[%s1919_s4 + $0x80] sm:$0xff] }
 0x1d3   :  { %v539_v63 = vpop.f32.mrf.mxu0  ;;  %844 = vmatpush.msrb.mxu2 %v1104_v57 }
 0x1d4   :  { %v564_v1 = vmax.f32 %v562_v62, 0.0  ;;  %v543_v31 = vadd.f32 %v539_v63, %v474_v61  ;;  %v748_v61 = vld [vmem:[%s1919_s4] sm:$0xff]  ;;  %v1101_v63 = vld [vmem:[%s1919_s4 + $0x118] sm:$0xff] }
 0x1d5   :  { %845 = vmatpush.msrb.mxu2 %v1103_v60  ;;  %v1102_v62 = vld [vmem:[%s1919_s4 + $0x120] sm:$0xff]  ;;  %779 = vmatpush.msrb.mxu0 %v748_v61 }
 0x1d6   :  { %v547_v2 = vadd.f32 %v1128_v50, %v543_v31  ;;  %648 = vmatmul.f32.vlgmr.msra.gmra.mxu2 %v564_v1  ;;  %v585_v3 = vrot.slane %v564_v1, 7  ;;  %v655_v10 = vrot.slane %v564_v1, 1  ;;  %v1080_v50 = vld [vmem:[%s1919_s4 + $0x90] sm:$0xff]  ;;  %v1099_v31 = vld [vmem:[%s1919_s4 + $0x108] sm:$0xff] }
 0x1d7   :  { %800 = vmatpush.msra.mxu1 %v1080_v50  ;;  %846 = vmatpush.msrb.mxu2 %v1102_v62 }
 0x1d8   :  { %v561_v5 = vmul.f32 %v551_v39, %v547_v2  ;;  %v590_v6 = vsel %vm192_vm1, 0.0, %v585_v3  ;;  %v342_v1 = vpop.f32.mrf.mxu1  ;;  %v1098_v39 = vld [vmem:[%s1919_s4 + $0x100] sm:$0xff] }
 0x1d9   :  { %1055 = vmatmul.msk.f32.vlgmr.msrb.gmra.mxu1 %vm1054_vm9, %v590_v6  ;;  %847 = vmatpush.msrb.mxu2 %v1101_v63  ;;  %v1129_v6 = vld [vmem:[%s1920_s5 + $0x3] ss:$0 sm:$0xff] }
 0x1da   :  { %v563_v7 = vadd.f32 %v561_v5, %v557_v4  ;;  %801 = vmatpush.msra.mxu1 %v1079_v54  ;;  %v1127_v4 = vld [vmem:[%s1920_s5 + $0x4] ss:$0 sm:$0xff] }
 0x1db   :  { %848 = vmatpush.msrb.mxu2 %v1100_v0  ;;  %v343_v18 = vadd.f32 %v1127_v4, %v342_v1 }
 0x1dc   :  { %v565_v40 = vmax.f32 %v563_v7, 0.0  ;;  %802 = vmatpush.msra.mxu1 %v1078_v58 }
 0x1dd   :  { %849 = vmatpush.msrb.mxu2 %v1099_v31 }
 0x1de   :  { %651 = vmatmul.f32.gmra.mxu2 %v565_v40  ;;  %v656_v8 = vrot.slane %v565_v40, 1  ;;  %v586_v9 = vrot.slane %v565_v40, 7 }
 0x1df   :  { %850 = vmatpush.msrb.mxu2 %v1098_v39 }
 0x1e0   :  { %v587_v11 = vsel %vm192_vm1, %v585_v3, %v586_v9  ;;  %v657_v12 = vsel %vm493_vm6, %v655_v10, %v656_v8  ;;  %v660_v13 = vsel %vm493_vm6, %v656_v8, 0.0  ;;  %v340_v8 = vadd.f32 %v1127_v4, %v339_v55  ;;  %v1130_v10 = vld [vmem:[%s1920_s5] ss:$0 sm:$0xff] }
 0x1e1   :  { %1057 = vmatmul.msk.f32.gmra.mxu1 %vm1056_vm10, %v587_v11  ;;  %1075 = vmatmul.msk.f32.vlgmr.msrb.gmra.mxu3 %vm1074_vm11, %v657_v12 }
 0x1e9   :  { %1077 = vmatmul.msk.f32.gmra.mxu3 %vm1076_vm12, %v660_v13  ;;  %v1131_v13 = vld [vmem:[%s1920_s5 + $0x1] ss:$0 sm:$0xff] }
 0x256   :  { %v626_v3 = vpop.f32.mrf.mxu1 }
 0x259   :  { %v649_v2 = vpop.f32.mrf.mxu2 }
 0x25a   :  { %v650_v5 = vadd.f32 %v649_v2, %v626_v3 }
 0x25e   :  { %v629_v14 = vpop.f32.mrf.mxu1 }
 0x261   :  { %v652_v11 = vpop.f32.mrf.mxu2 }
 0x262   :  { %v653_v15 = vadd.f32 %v652_v11, %v629_v14 }
 0x264   :  { %v697_v7 = vpop.f32.mrf.mxu3 }
 0x265   :  { %v703_v40 = vadd.f32 %v697_v7, %v650_v5 }
 0x267   :  { %v707_v9 = vadd.f32 %v1129_v6, %v703_v40 }
 0x269   :  { %v709_v12 = vadd.f32 %v707_v9, %v340_v8 }
 0x26b   :  { %v713_v16 = vmul.f32 %v1130_v10, %v709_v12 }
 0x26c   :  { %v700_v24 = vpop.f32.mrf.mxu3 }
 0x26d   :  { %v704_v17 = vadd.f32 %v700_v24, %v653_v15  ;;  %v717_v41 = vadd.f32 %v1131_v13, %v713_v16 }
 0x26f   :  { %v708_v38 = vadd.f32 %v1129_v6, %v704_v17  ;;  %v719_v42 = vmax.f32 %v717_v41, 0.0 }
 0x271   :  { %v710_v19 = vadd.f32 %v708_v38, %v343_v18  ;;  %803 = vmatmul.f32.vlgmr.msra.gmra.mxu1 %v719_v42  ;;  %v740_v20 = vrot.slane %v719_v42, 7  ;;  %v810_v29 = vrot.slane %v719_v42, 1 }
 0x273   :  { %v745_v21 = vsel %vm192_vm1, 0.0, %v740_v20  ;;  %v714_v23 = vmul.f32 %v1130_v10, %v710_v19 }
 0x274   :  { %1095 = vmatmul.msk.f32.vlgmr.msrb.gmra.mxu0 %vm1054_vm9, %v745_v21 }
 0x275   :  { %v718_v25 = vadd.f32 %v1131_v13, %v714_v23 }
 0x277   :  { %v720_v26 = vmax.f32 %v718_v25, 0.0 }
 0x279   :  { %806 = vmatmul.f32.gmra.mxu1 %v720_v26  ;;  %v811_v27 = vrot.slane %v720_v26, 1  ;;  %v741_v28 = vrot.slane %v720_v26, 7 }
 0x27b   :  { %v742_v30 = vsel %vm192_vm1, %v740_v20, %v741_v28  ;;  %v812_v32 = vsel %vm493_vm6, %v810_v29, %v811_v27  ;;  %v815_v22 = vsel %vm493_vm6, %v811_v27, 0.0 }
 0x27c   :  { %1097 = vmatmul.msk.f32.gmra.mxu0 %vm1056_vm10, %v742_v30  ;;  %1115 = vmatmul.msk.f32.vlgmr.msrb.gmra.mxu2 %vm1074_vm11, %v812_v32 }
 0x284   :  { %1117 = vmatmul.msk.f32.gmra.mxu2 %vm1076_vm12, %v815_v22 }
 0x2ee   :  { %v804_v34 = vpop.f32.mrf.mxu1 }
 0x2f1   :  { %v781_v33 = vpop.f32.mrf.mxu0 }
 0x2f2   :  { %v805_v43 = vadd.f32 %v804_v34, %v781_v33 }
 0x2f6   :  { %v807_v36 = vpop.f32.mrf.mxu1 }
 0x2f9   :  { %v784_v45 = vpop.f32.mrf.mxu0 }
 0x2fa   :  { %v808_v49 = vadd.f32 %v807_v36, %v784_v45 }
 0x2ff   :  { %v852_v35 = vpop.f32.mrf.mxu2 }
 0x300   :  { %v858_v44 = vadd.f32 %v852_v35, %v805_v43 }
 0x302   :  { %v862_v46 = vadd.f32 %v1132_v37, %v858_v44 }
 0x304   :  { %1133 = vtanh.f32 %v862_v46 }
 0x307   :  { %v855_v47 = vpop.f32.mrf.mxu2 }
 0x308   :  { %v859_v48 = vadd.f32 %v855_v47, %v808_v49 }
 0x30a   :  { %v863_v50 = vadd.f32 %v1132_v37, %v859_v48  ;;  %v1134_v53 = vpop.eup %1133 }
 0x30b   :  { %v879_v52 = vsel %vm866_vm13, %v1134_v53, -inf  ;;  %v867_v55 = vsel %vm866_vm13, %v1134_v53, inf }
 0x30c   :  { %1135 = vtanh.f32 %v863_v50 }
 0x312   :  { %v1136_v51 = vpop.eup %1135 }
 0x313   :  { %v880_v54 = vsel %vm866_vm13, %v1136_v51, -inf  ;;  %v868_v56 = vsel %vm866_vm13, %v1136_v51, inf }
 0x314   :  { %v881_v57 = vmax.f32 %v879_v52, %v880_v54  ;;  %v869_v58 = vmin.f32 %v867_v55, %v868_v56 }
 0x316   :  { %882 = vmax.xlane.f32.xlu1 %v881_v57  ;;  %870 = vmin.xlane.f32.xlu0 %v869_v58 }
 0x389   :  { %v883_v59 = vpop.xlane.xlu1 %882  ;;  %v871_v60 = vpop.xlane.xlu0 %870 }
 0x38a   :  { %v884_v61 = vrot.slane %v883_v59, 4  ;;  %v872_v62 = vrot.slane %v871_v60, 4 }
 0x38c   :  { %v885_v63 = vmax.f32 %v883_v59, %v884_v61  ;;  %v873_v0 = vmin.f32 %v871_v60, %v872_v62 }
 0x38e   :  { %v886_v1 = vrot.slane %v885_v63, 2  ;;  %v874_v31 = vrot.slane %v873_v0, 2 }
 0x390   :  { %v887_v39 = vmax.f32 %v885_v63, %v886_v1  ;;  %v875_v2 = vmin.f32 %v873_v0, %v874_v31 }
 0x392   :  { %v876_v3 = vrot.slane %v875_v2, 1  ;;  %v888_v4 = vrot.slane %v887_v39, 1 }
 0x394   :  { %v877_v5 = vmin.f32 %v875_v2, %v876_v3  ;;  %v889_v6 = vmax.f32 %v887_v39, %v888_v4 }
 0x396   :  { %1118 = vpush %v877_v5 }
 0x397   :  { %1120 = vpush %v889_v6 }
 0x3c7   :  { %s1119_s5 = spop %1118 }
 0x3c8   :  { %s1121_s27 = spop %1120  ;;  %v891_v13 = vstv %s1119_s5 }
 0x3c9   :  { %s894_s28 = ssub.f32 %s1121_s27, %s1119_s5  ;;  %v892_v16 = vsub.f32 %v1134_v53, %v891_v13  ;;  %v893_v18 = vsub.f32 %v1136_v51, %v891_v13 }
 0x3cb   :  { %v895_v7 = vstv %s894_s28 }
 0x3cc   :  { %1137 = vrcp.f32 %v895_v7  ;;  %v907_v10 = vand.u32 2147483648, %v895_v7  ;;  %v905_v12 = vand.u32 2147483647, %v895_v7  ;;  %vm901_vm15 = vweird.f32 %v895_v7 }
 0x3ce   :  { %v908_v15 = vor.u32 1.1754944e-38, %v907_v10  ;;  %vm906_vm1 = vcmp.eq.f32.partialorder %v905_v12, 8.507059e+37 }
 0x3d2   :  { %v1138_v40 = vpop.eup %1137 }
 0x3d3   :  { %v897_v8 = vmul.f32 %v1138_v40, %v895_v7  ;;  %vm902_vm14 = vweird.f32 %v1138_v40 }
 0x3d4   :  { %vm903_vm0 = vmor %vm901_vm15, %vm902_vm14 }
 0x3d5   :  { %v898_v9 = vsub.f32 1.0, %v897_v8 }
 0x3d7   :  { %v899_v11 = vmul.f32 %v1138_v40, %v898_v9 }
 0x3d9   :  { %v900_v14 = vadd.f32 %v1138_v40, %v899_v11 }
 0x3db   :  { %v904_v24 = vsel %vm903_vm0, %v1138_v40, %v900_v14 }
 0x3dc   :  { %v909_v17 = vsel %vm906_vm1, %v908_v15, %v904_v24 }
 0x3dd   :  { %v910_v41 = vmul.f32 %v909_v17, %v892_v16  ;;  %v911_v38 = vmul.f32 %v909_v17, %v893_v18 }
 0x3df   :  { %912 = vxpose.xlu2.b32.start.end [1/1] (short) (narrow) %v910_v41, 24 }
 0x3f7   :  { %944 = vxpose.xlu2.b32.start.end [1/1] (short) (narrow) %v911_v38, 24 }
 0x478   :  { %v928_v42 = vpop.trf.xlu2 }
 0x479   :  { %977 = vst.msk [vmem:[#allocation2] sm:$0xff] %vm976_vm2, %v928_v42 }
 0x480   :  { %v929_v19 = vpop.trf.xlu2 }
 0x481   :  { %978 = vst.msk [vmem:[#allocation2 + $0x8] sm:$0xff] %vm976_vm2, %v929_v19 }
 0x488   :  { %v930_v20 = vpop.trf.xlu2 }
 0x489   :  { %979 = vst.msk [vmem:[#allocation2 + $0x10] sm:$0xff] %vm976_vm2, %v930_v20 }
 0x490   :  { %v960_v21 = vpop.trf.xlu2 }
 0x491   :  { %980 = vst.msk [vmem:[#allocation2 + $0x18] sm:$0xff] %vm976_vm2, %v960_v21 }
 0x498   :  { %v961_v23 = vpop.trf.xlu2 }
 0x499   :  { %981 = vst.msk [vmem:[#allocation2 + $0x20] sm:$0xff] %vm976_vm2, %v961_v23 }
 0x4a0   :  { %v962_v25 = vpop.trf.xlu2 }
 0x4a1   :  { %982 = vst.msk [vmem:[#allocation2 + $0x28] sm:$0xff] %vm976_vm2, %v962_v25 }
 0x4a2   :  { %995 = dma.vmem_to_hbm [thread:$0]  %s988_s30, 768, %s990_s8, [#allocation3], %s1167_s9, %s1167_s9, %s1168_s10  }
 0x4a3   :  { %1163 = dma.done.wait [#allocation3], 768  }
 0x4a4   :  { %1164 = vsyncadd [#allocation3], 4294966528 }
 0x4a5   :  { %1000 = vsyncpa [#allocation3], 1 }

</bundles_post_ra>
